<compile_context>
chip_gen: v7x
topology: tpu7x:2x2x1
jax: 0.10.0
libtpu: 0.0.40
codegen_flags: <defaults>
</compile_context>

<pallas_src>
import functools

import jax
import jax.numpy as jnp
from jax import lax
from jax.experimental import pallas as pl
from jax.experimental.pallas import tpu as pltpu


# ----------------------------------------------------------------------------
# Pallas kernels: one fused (P_tile, K*Cin) @ (K*Cin, Cout) matmul
#   + folded-BN affine (+ optional residual) (+ optional ReLU)
# ----------------------------------------------------------------------------
def _matmul_bn_kernel(p_ref, w_ref, s_ref, b_ref, o_ref, *, relu):
    acc = jnp.dot(p_ref[...], w_ref[...], preferred_element_type=jnp.float32)
    y = acc * s_ref[...] + b_ref[...]
    if relu:
        y = jnp.maximum(y, 0.0)
    o_ref[...] = y.astype(o_ref.dtype)


def _matmul_bn_res_kernel(p_ref, w_ref, s_ref, b_ref, r_ref, o_ref, *, relu):
    acc = jnp.dot(p_ref[...], w_ref[...], preferred_element_type=jnp.float32)
    y = acc * s_ref[...] + b_ref[...] + r_ref[...]
    if relu:
        y = jnp.maximum(y, 0.0)
    o_ref[...] = y.astype(o_ref.dtype)


def _round_up(x, m):
    return (x + m - 1) // m * m


def _pick_p_tile(P, k_cin, cout, has_res):
    """Pick a P tile so double-buffered bf16 patches + f32 out (+res) stay
    well under the 32 MiB scoped-VMEM default (v7x-safe)."""
    bytes_per_row = 4 * k_cin + 8 * cout * (2 if has_res else 1)
    tile = (24 << 20) // max(bytes_per_row, 1)
    tile = max(16, min(2048, tile))
    tile = _round_up(min(tile, P), 16)
    return tile


def fused_conv_matmul(patches, w_fold, scale, bias, residual, apply_relu):
    """patches: (P, K*Cin); w_fold: (K*Cin, Cout); scale/bias: (Cout,);
    residual: (P, Cout) or None.  Returns (P, Cout) float32."""
    P, KC = patches.shape
    Cout = w_fold.shape[-1]
    has_res = residual is not None

    tile = _pick_p_tile(P, KC, Cout, has_res)
    P_pad = _round_up(P, tile)

    patches = patches.astype(jnp.bfloat16)
    if P_pad != P:
        patches = jnp.pad(patches, ((0, P_pad - P), (0, 0)))
    w_fold = w_fold.astype(jnp.bfloat16)
    scale = scale.reshape(1, Cout).astype(jnp.float32)
    bias = bias.reshape(1, Cout).astype(jnp.float32)

    in_specs = [
        pl.BlockSpec((tile, KC), lambda i: (i, 0)),      # patches tile
        pl.BlockSpec((KC, Cout), lambda i: (0, 0)),      # folded weights
        pl.BlockSpec((1, Cout), lambda i: (0, 0)),       # BN scale
        pl.BlockSpec((1, Cout), lambda i: (0, 0)),       # BN bias
    ]
    args = [patches, w_fold, scale, bias]
    if has_res:
        res = residual.astype(jnp.float32)
        if P_pad != P:
            res = jnp.pad(res, ((0, P_pad - P), (0, 0)))
        in_specs.append(pl.BlockSpec((tile, Cout), lambda i: (i, 0)))
        args.append(res)
        kern = functools.partial(_matmul_bn_res_kernel, relu=apply_relu)
    else:
        kern = functools.partial(_matmul_bn_kernel, relu=apply_relu)

    out = pl.pallas_call(
        kern,
        out_shape=jax.ShapeDtypeStruct((P_pad, Cout), jnp.float32),
        grid_spec=pltpu.PrefetchScalarGridSpec(
            num_scalar_prefetch=0,
            grid=(P_pad // tile,),
            in_specs=in_specs,
            out_specs=pl.BlockSpec((tile, Cout), lambda i: (i, 0)),
        ),
        compiler_params=pltpu.CompilerParams(
            dimension_semantics=("parallel",)),
    )(*args)
    return out[:P] if P_pad != P else out


# ----------------------------------------------------------------------------
# Glue: im2col with the 27 taps folded into the channel axis (pure layout work)
# ----------------------------------------------------------------------------
def _im2col(x_pad, K, stride, out_spatial):
    Do, Ho, Wo = out_spatial
    C = x_pad.shape[-1]
    cols = []
    for kd in range(K):
        for kh in range(K):
            for kw in range(K):
                p = x_pad[:, kd:kd + stride * Do:stride,
                             kh:kh + stride * Ho:stride,
                             kw:kw + stride * Wo:stride, :]
                cols.append(p.reshape(-1, C))
    return jnp.concatenate(cols, axis=-1)          # (P, K^3 * C)


def conv3d_bn(x, p, stride, residual=None, apply_relu=False):
    """Conv3d(k=3, pad=1, stride) + folded BN (+residual) (+ReLU)."""
    N, D, H, W, Cin = x.shape
    K, pad = 3, 1
    Do = (D + 2 * pad - K) // stride + 1
    Ho = (H + 2 * pad - K) // stride + 1
    Wo = (W + 2 * pad - K) // stride + 1
    xp = jnp.pad(x.astype(jnp.bfloat16),
                 ((0, 0), (pad, pad), (pad, pad), (pad, pad), (0, 0)))
    patches = _im2col(xp, K, stride, (Do, Ho, Wo))
    Cout = p["dhwio"].shape[-1]
    w_fold = p["dhwio"].reshape(K ** 3 * Cin, Cout)
    res = residual.reshape(-1, Cout) if residual is not None else None
    out = fused_conv_matmul(patches, w_fold, p["scale"], p["bias"],
                            res, apply_relu)
    return out.reshape(N, Do, Ho, Wo, Cout)


# Phase decomposition of the stride-2 transposed conv (per output parity):
#   even output index: uses flipped-kernel tap 1, input offset 0
#   odd  output index: uses flipped-kernel taps 0 (offset 0) and 2 (offset +1)
_PHASE_TAPS = {0: ((1, 0),), 1: ((0, 0), (2, 1))}


def deconv3d_bn(x, p, residual=None, apply_relu=False):
    """ConvTranspose3d(k=3, stride=2, pad=1, output_pad=1) + folded BN
    (+residual)(+ReLU), phase-decomposed into 8 stride-1 sub-convs so no work
    is done on inserted zeros."""
    N, D, H, W, Cin = x.shape
    w = p["dhwio"]                       # (3,3,3,Cin,Cout), flipped fwd kernel
    Cout = w.shape[-1]
    xp = jnp.pad(x.astype(jnp.bfloat16),
                 ((0, 0), (0, 1), (0, 1), (0, 1), (0, 0)))
    out = jnp.zeros((N, 2 * D, 2 * H, 2 * W, Cout), jnp.float32)
    for pd in (0, 1):
        for ph in (0, 1):
            for pw in (0, 1):
                cols, wrows = [], []
                for kd, od in _PHASE_TAPS[pd]:
                    for kh, oh in _PHASE_TAPS[ph]:
                        for kw, ow in _PHASE_TAPS[pw]:
                            sl = xp[:, od:od + D, oh:oh + H, ow:ow + W, :]
                            cols.append(sl.reshape(-1, Cin))
                            wrows.append(w[kd, kh, kw])       # (Cin, Cout)
                patches = jnp.concatenate(cols, axis=-1)       # (P, T*Cin)
                w_fold = jnp.concatenate(wrows, axis=0)        # (T*Cin, Cout)
                res_ph = None
                if residual is not None:
                    res_ph = residual[:, pd::2, ph::2, pw::2, :].reshape(-1,
                                                                         Cout)
                y = fused_conv_matmul(patches, w_fold, p["scale"], p["bias"],
                                      res_ph, apply_relu)
                out = out.at[:, pd::2, ph::2, pw::2, :].set(
                    y.reshape(N, D, H, W, Cout))
    return out


# ----------------------------------------------------------------------------
# Deterministic parameter construction (conv weights + folded BN affine)
# ----------------------------------------------------------------------------
def _make_convbn(key, cin, cout, transpose=False):
    kw_key, g_key, b_key, m_key, v_key = jax.random.split(key, 5)
    K = 3
    std = 0.1 / float(cin * K ** 3) ** 0.5
    if transpose:
        # PyTorch ConvTranspose3d weight: (Cin, Cout, kD, kH, kW)
        w = jax.random.normal(kw_key, (cin, cout, K, K, K), jnp.float32) * std
        # equivalent forward conv: flip spatial, -> (kD,kH,kW,Cin,Cout)
        w_c = jnp.flip(w, axis=(2, 3, 4)).transpose(2, 3, 4, 0, 1)
    else:
        # PyTorch Conv3d weight: (Cout, Cin, kD, kH, kW)
        w = jax.random.normal(kw_key, (cout, cin, K, K, K), jnp.float32) * std
        w_c = w.transpose(2, 3, 4, 1, 0)                  # (kD,kH,kW,Cin,Cout)
    gamma = 1.0 + 0.2 * jax.random.normal(g_key, (cout,), jnp.float32)
    beta = 0.1 * jax.random.normal(b_key, (cout,), jnp.float32)
    mean = 0.1 * jax.random.normal(m_key, (cout,), jnp.float32)
    var = 0.5 + jax.random.uniform(v_key, (cout,), jnp.float32)
    eps = 1e-5
    scale = gamma / jnp.sqrt(var + eps)
    bias = beta - mean * scale
    return dict(dhwio=w_c, scale=scale, bias=bias)


def init_hourglass_params(key, inplanes):
    C, C2 = inplanes, inplanes * 2
    keys = jax.random.split(key, 6)
    return dict(
        conv1=_make_convbn(keys[0], C, C2),
        conv2=_make_convbn(keys[1], C2, C2),
        conv3=_make_convbn(keys[2], C2, C2),
        conv4=_make_convbn(keys[3], C2, C2),
        conv5=_make_convbn(keys[4], C2, C2, transpose=True),
        conv6=_make_convbn(keys[5], C2, C, transpose=True),
    )


# ----------------------------------------------------------------------------
# hourglass.forward
# ----------------------------------------------------------------------------
def hourglass_forward(params, x, presqu=None, postsqu=None):
    out = conv3d_bn(x, params["conv1"], stride=2, apply_relu=True)       # conv1
    pre = conv3d_bn(out, params["conv2"], stride=1,
                    residual=postsqu, apply_relu=True)                   # conv2 (+postsqu)+relu
    out = conv3d_bn(pre, params["conv3"], stride=2, apply_relu=True)     # conv3
    out = conv3d_bn(out, params["conv4"], stride=1, apply_relu=True)     # conv4
    res5 = presqu if presqu is not None else pre
    post = deconv3d_bn(out, params["conv5"],
                       residual=res5, apply_relu=True)                   # conv5 (+res)+relu
    out = deconv3d_bn(post, params["conv6"],
                      residual=None, apply_relu=False)                   # conv6
    return out, pre, post


# ----------------------------------------------------------------------------
# Pure-JAX reference (lax.conv_general_dilated) for correctness check
# ----------------------------------------------------------------------------
def _ref_conv(x, p, stride, residual=None, relu=False):
    y = lax.conv_general_dilated(
        x, p["dhwio"], (stride,) * 3, [(1, 1)] * 3,
        dimension_numbers=("NDHWC", "DHWIO", "NDHWC"))
    y = y * p["scale"] + p["bias"]
    if residual is not None:
        y = y + residual
    if relu:
        y = jnp.maximum(y, 0.0)
    return y


def _ref_deconv(x, p, residual=None, relu=False):
    y = lax.conv_general_dilated(
        x, p["dhwio"], (1, 1, 1), [(1, 2)] * 3, lhs_dilation=(2, 2, 2),
        dimension_numbers=("NDHWC", "DHWIO", "NDHWC"))
    y = y * p["scale"] + p["bias"]
    if residual is not None:
        y = y + residual
    if relu:
        y = jnp.maximum(y, 0.0)
    return y


def hourglass_ref(params, x, presqu=None, postsqu=None):
    out = _ref_conv(x, params["conv1"], 2, relu=True)
    pre = _ref_conv(out, params["conv2"], 1, residual=postsqu, relu=True)
    out = _ref_conv(pre, params["conv3"], 2, relu=True)
    out = _ref_conv(out, params["conv4"], 1, relu=True)
    res5 = presqu if presqu is not None else pre
    post = _ref_deconv(out, params["conv5"], residual=res5, relu=True)
    out = _ref_deconv(post, params["conv6"], residual=None, relu=False)
    return out, pre, post


if __name__ == "__main__":
    key = jax.random.PRNGKey(0)
    kx, kp, ka, kb = jax.random.split(key, 4)

    N, C, D, H, W = 1, 4, 8, 8, 8            # inplanes = 4
    x = jax.random.normal(kx, (N, D, H, W, C), jnp.float32)
    params = init_hourglass_params(kp, C)

    fwd = jax.jit(hourglass_forward)

    def _check(name, got, want, tol=5e-2):
        # bf16 MXU inputs vs f32 reference -> normalized max-error check.
        err = float(jnp.max(jnp.abs(got - want)) /
                    (jnp.max(jnp.abs(want)) + 1e-6))
        assert err < tol, f"{name}: normalized max err {err:.4f} >= {tol}"

    # Case 1: presqu=None, postsqu=None
    out, pre, post = fwd(params, x, None, None)
    jax.block_until_ready((out, pre, post))
    r_out, r_pre, r_post = hourglass_ref(params, x, None, None)
    _check("out", out, r_out)
    _check("pre", pre, r_pre)
    _check("post", post, r_post)

    # Case 2: with presqu / postsqu skip tensors (shape = pre's shape)
    presqu = jax.random.normal(ka, (N, D // 2, H // 2, W // 2, 2 * C),
                               jnp.float32)
    postsqu = jax.random.normal(kb, (N, D // 2, H // 2, W // 2, 2 * C),
                                jnp.float32)
    out2, pre2, post2 = fwd(params, x, presqu, postsqu)
    jax.block_until_ready((out2, pre2, post2))
    r2 = hourglass_ref(params, x, presqu, postsqu)
    _check("out2", out2, r2[0])
    _check("pre2", pre2, r2[1])
    _check("post2", post2, r2[2])

    print("KERNEL_OK")
</pallas_src>

<mosaic_0001>
module attributes {stable_mosaic.version = 11 : i64} {
  func.func @_matmul_bn_kernel(%arg0: i32, %arg1: memref<64x108xbf16, #tpu.memory_space<vmem>>, %arg2: memref<108x8xbf16, #tpu.memory_space<vmem>>, %arg3: memref<1x8xf32, #tpu.memory_space<vmem>>, %arg4: memref<1x8xf32, #tpu.memory_space<vmem>>, %arg5: memref<64x8xf32, #tpu.memory_space<vmem>>) attributes {dimension_semantics = [#tpu.dimension_semantics<parallel>], iteration_bounds = array<i64: 1>, scalar_prefetch = 0 : i64, scratch_operands = 0 : i64, tpu.core_type = #tpu.core_type<tc>, window_params = [{transform_indices = @transform_0, window_bounds = array<i64: 64, 108>}, {pipeline_mode = #tpu.pipeline_mode<synchronous>, transform_indices = @transform_1, window_bounds = array<i64: 108, 8>}, {pipeline_mode = #tpu.pipeline_mode<synchronous>, transform_indices = @transform_2, window_bounds = array<i64: 1, 8>}, {pipeline_mode = #tpu.pipeline_mode<synchronous>, transform_indices = @transform_3, window_bounds = array<i64: 1, 8>}, {transform_indices = @transform_4, window_bounds = array<i64: 64, 8>}]} {
    %c0 = arith.constant 0 : index
    %c0_0 = arith.constant 0 : index
    %0 = vector.load %arg1[%c0, %c0_0] : memref<64x108xbf16, #tpu.memory_space<vmem>>, vector<64x108xbf16>
    %c0_1 = arith.constant 0 : index
    %c0_2 = arith.constant 0 : index
    %1 = vector.load %arg2[%c0_1, %c0_2] : memref<108x8xbf16, #tpu.memory_space<vmem>>, vector<108x8xbf16>
    %cst = arith.constant dense<0.000000e+00> : vector<64x8xf32>
    %2 = tpu.matmul %0, %1, %cst {dimension_numbers = #tpu.dot_dimension_numbers<[1], [0], [0], [1], [0, 0, 1, 1], [], []>} : vector<64x108xbf16>, vector<108x8xbf16>, vector<64x8xf32> -> vector<64x8xf32>
    %c0_3 = arith.constant 0 : index
    %c0_4 = arith.constant 0 : index
    %3 = vector.load %arg3[%c0_3, %c0_4] : memref<1x8xf32, #tpu.memory_space<vmem>>, vector<1x8xf32>
    %4 = vector.broadcast %3 : vector<1x8xf32> to vector<64x8xf32>
    %5 = arith.mulf %2, %4 : vector<64x8xf32>
    %c0_5 = arith.constant 0 : index
    %c0_6 = arith.constant 0 : index
    %6 = vector.load %arg4[%c0_5, %c0_6] : memref<1x8xf32, #tpu.memory_space<vmem>>, vector<1x8xf32>
    %7 = vector.broadcast %6 : vector<1x8xf32> to vector<64x8xf32>
    %8 = arith.addf %5, %7 : vector<64x8xf32>
    %cst_7 = arith.constant 0.000000e+00 : f32
    %9 = vector.broadcast %cst_7 : f32 to vector<64x8xf32>
    %10 = arith.maximumf %8, %9 : vector<64x8xf32>
    %c0_8 = arith.constant 0 : index
    %c0_9 = arith.constant 0 : index
    %11 = vector.load %arg5[%c0_8, %c0_9] : memref<64x8xf32, #tpu.memory_space<vmem>>, vector<64x8xf32>
    tpu.vector_store %arg5[%c0_8, %c0_9], %10 {strides = array<i32>} : memref<64x8xf32, #tpu.memory_space<vmem>>, vector<64x8xf32>,
    return
  }
  func.func @transform_0(%arg0: i32) -> (i32, i32) {
    %c0_i32 = arith.constant 0 : i32
    %c0_i32_0 = arith.constant 0 : i32
    return %arg0, %c0_i32 : i32, i32
  }
  func.func @transform_1(%arg0: i32) -> (i32, i32) {
    %c0_i32 = arith.constant 0 : i32
    %c0_i32_0 = arith.constant 0 : i32
    %c0_i32_1 = arith.constant 0 : i32
    return %c0_i32, %c0_i32_0 : i32, i32
  }
  func.func @transform_2(%arg0: i32) -> (i32, i32) {
    %c0_i32 = arith.constant 0 : i32
    %c0_i32_0 = arith.constant 0 : i32
    %c0_i32_1 = arith.constant 0 : i32
    return %c0_i32, %c0_i32_0 : i32, i32
  }
  func.func @transform_3(%arg0: i32) -> (i32, i32) {
    %c0_i32 = arith.constant 0 : i32
    %c0_i32_0 = arith.constant 0 : i32
    %c0_i32_1 = arith.constant 0 : i32
    return %c0_i32, %c0_i32_0 : i32, i32
  }
  func.func @transform_4(%arg0: i32) -> (i32, i32) {
    %c0_i32 = arith.constant 0 : i32
    %c0_i32_0 = arith.constant 0 : i32
    return %arg0, %c0_i32 : i32, i32
  }
}

module attributes {stable_mosaic.version = 11 : i64} {
  func.func @_matmul_bn_kernel(%arg0: i32, %arg1: memref<64x216xbf16, #tpu.memory_space<vmem>>, %arg2: memref<216x8xbf16, #tpu.memory_space<vmem>>, %arg3: memref<1x8xf32, #tpu.memory_space<vmem>>, %arg4: memref<1x8xf32, #tpu.memory_space<vmem>>, %arg5: memref<64x8xf32, #tpu.memory_space<vmem>>) attributes {dimension_semantics = [#tpu.dimension_semantics<parallel>], iteration_bounds = array<i64: 1>, scalar_prefetch = 0 : i64, scratch_operands = 0 : i64, tpu.core_type = #tpu.core_type<tc>, window_params = [{transform_indices = @transform_0, window_bounds = array<i64: 64, 216>}, {pipeline_mode = #tpu.pipeline_mode<synchronous>, transform_indices = @transform_1, window_bounds = array<i64: 216, 8>}, {pipeline_mode = #tpu.pipeline_mode<synchronous>, transform_indices = @transform_2, window_bounds = array<i64: 1, 8>}, {pipeline_mode = #tpu.pipeline_mode<synchronous>, transform_indices = @transform_3, window_bounds = array<i64: 1, 8>}, {transform_indices = @transform_4, window_bounds = array<i64: 64, 8>}]} {
    %c0 = arith.constant 0 : index
    %c0_0 = arith.constant 0 : index
    %0 = vector.load %arg1[%c0, %c0_0] : memref<64x216xbf16, #tpu.memory_space<vmem>>, vector<64x216xbf16>
    %c0_1 = arith.constant 0 : index
    %c0_2 = arith.constant 0 : index
    %1 = vector.load %arg2[%c0_1, %c0_2] : memref<216x8xbf16, #tpu.memory_space<vmem>>, vector<216x8xbf16>
    %cst = arith.constant dense<0.000000e+00> : vector<64x8xf32>
    %2 = tpu.matmul %0, %1, %cst {dimension_numbers = #tpu.dot_dimension_numbers<[1], [0], [0], [1], [0, 0, 1, 1], [], []>} : vector<64x216xbf16>, vector<216x8xbf16>, vector<64x8xf32> -> vector<64x8xf32>
    %c0_3 = arith.constant 0 : index
    %c0_4 = arith.constant 0 : index
    %3 = vector.load %arg3[%c0_3, %c0_4] : memref<1x8xf32, #tpu.memory_space<vmem>>, vector<1x8xf32>
    %4 = vector.broadcast %3 : vector<1x8xf32> to vector<64x8xf32>
    %5 = arith.mulf %2, %4 : vector<64x8xf32>
    %c0_5 = arith.constant 0 : index
    %c0_6 = arith.constant 0 : index
    %6 = vector.load %arg4[%c0_5, %c0_6] : memref<1x8xf32, #tpu.memory_space<vmem>>, vector<1x8xf32>
    %7 = vector.broadcast %6 : vector<1x8xf32> to vector<64x8xf32>
    %8 = arith.addf %5, %7 : vector<64x8xf32>
    %cst_7 = arith.constant 0.000000e+00 : f32
    %9 = vector.broadcast %cst_7 : f32 to vector<64x8xf32>
    %10 = arith.maximumf %8, %9 : vector<64x8xf32>
    %c0_8 = arith.constant 0 : index
    %c0_9 = arith.constant 0 : index
    %11 = vector.load %arg5[%c0_8, %c0_9] : memref<64x8xf32, #tpu.memory_space<vmem>>, vector<64x8xf32>
    tpu.vector_store %arg5[%c0_8, %c0_9], %10 {strides = array<i32>} : memref<64x8xf32, #tpu.memory_space<vmem>>, vector<64x8xf32>,
    return
  }
  func.func @transform_0(%arg0: i32) -> (i32, i32) {
    %c0_i32 = arith.constant 0 : i32
    %c0_i32_0 = arith.constant 0 : i32
    return %arg0, %c0_i32 : i32, i32
  }
  func.func @transform_1(%arg0: i32) -> (i32, i32) {
    %c0_i32 = arith.constant 0 : i32
    %c0_i32_0 = arith.constant 0 : i32
    %c0_i32_1 = arith.constant 0 : i32
    return %c0_i32, %c0_i32_0 : i32, i32
  }
  func.func @transform_2(%arg0: i32) -> (i32, i32) {
    %c0_i32 = arith.constant 0 : i32
    %c0_i32_0 = arith.constant 0 : i32
    %c0_i32_1 = arith.constant 0 : i32
    return %c0_i32, %c0_i32_0 : i32, i32
  }
  func.func @transform_3(%arg0: i32) -> (i32, i32) {
    %c0_i32 = arith.constant 0 : i32
    %c0_i32_0 = arith.constant 0 : i32
    %c0_i32_1 = arith.constant 0 : i32
    return %c0_i32, %c0_i32_0 : i32, i32
  }
  func.func @transform_4(%arg0: i32) -> (i32, i32) {
    %c0_i32 = arith.constant 0 : i32
    %c0_i32_0 = arith.constant 0 : i32
    return %arg0, %c0_i32 : i32, i32
  }
}

module attributes {stable_mosaic.version = 11 : i64} {
  func.func @_matmul_bn_kernel(%arg0: i32, %arg1: memref<16x216xbf16, #tpu.memory_space<vmem>>, %arg2: memref<216x8xbf16, #tpu.memory_space<vmem>>, %arg3: memref<1x8xf32, #tpu.memory_space<vmem>>, %arg4: memref<1x8xf32, #tpu.memory_space<vmem>>, %arg5: memref<16x8xf32, #tpu.memory_space<vmem>>) attributes {dimension_semantics = [#tpu.dimension_semantics<parallel>], iteration_bounds = array<i64: 1>, scalar_prefetch = 0 : i64, scratch_operands = 0 : i64, tpu.core_type = #tpu.core_type<tc>, window_params = [{transform_indices = @transform_0, window_bounds = array<i64: 16, 216>}, {pipeline_mode = #tpu.pipeline_mode<synchronous>, transform_indices = @transform_1, window_bounds = array<i64: 216, 8>}, {pipeline_mode = #tpu.pipeline_mode<synchronous>, transform_indices = @transform_2, window_bounds = array<i64: 1, 8>}, {pipeline_mode = #tpu.pipeline_mode<synchronous>, transform_indices = @transform_3, window_bounds = array<i64: 1, 8>}, {transform_indices = @transform_4, window_bounds = array<i64: 16, 8>}]} {
    %c0 = arith.constant 0 : index
    %c0_0 = arith.constant 0 : index
    %0 = vector.load %arg1[%c0, %c0_0] : memref<16x216xbf16, #tpu.memory_space<vmem>>, vector<16x216xbf16>
    %c0_1 = arith.constant 0 : index
    %c0_2 = arith.constant 0 : index
    %1 = vector.load %arg2[%c0_1, %c0_2] : memref<216x8xbf16, #tpu.memory_space<vmem>>, vector<216x8xbf16>
    %cst = arith.constant dense<0.000000e+00> : vector<16x8xf32>
    %2 = tpu.matmul %0, %1, %cst {dimension_numbers = #tpu.dot_dimension_numbers<[1], [0], [0], [1], [0, 0, 1, 1], [], []>} : vector<16x216xbf16>, vector<216x8xbf16>, vector<16x8xf32> -> vector<16x8xf32>
    %c0_3 = arith.constant 0 : index
    %c0_4 = arith.constant 0 : index
    %3 = vector.load %arg3[%c0_3, %c0_4] : memref<1x8xf32, #tpu.memory_space<vmem>>, vector<1x8xf32>
    %4 = vector.broadcast %3 : vector<1x8xf32> to vector<16x8xf32>
    %5 = arith.mulf %2, %4 : vector<16x8xf32>
    %c0_5 = arith.constant 0 : index
    %c0_6 = arith.constant 0 : index
    %6 = vector.load %arg4[%c0_5, %c0_6] : memref<1x8xf32, #tpu.memory_space<vmem>>, vector<1x8xf32>
    %7 = vector.broadcast %6 : vector<1x8xf32> to vector<16x8xf32>
    %8 = arith.addf %5, %7 : vector<16x8xf32>
    %cst_7 = arith.constant 0.000000e+00 : f32
    %9 = vector.broadcast %cst_7 : f32 to vector<16x8xf32>
    %10 = arith.maximumf %8, %9 : vector<16x8xf32>
    %c0_8 = arith.constant 0 : index
    %c0_9 = arith.constant 0 : index
    %11 = vector.load %arg5[%c0_8, %c0_9] : memref<16x8xf32, #tpu.memory_space<vmem>>, vector<16x8xf32>
    tpu.vector_store %arg5[%c0_8, %c0_9], %10 {strides = array<i32>} : memref<16x8xf32, #tpu.memory_space<vmem>>, vector<16x8xf32>,
    return
  }
  func.func @transform_0(%arg0: i32) -> (i32, i32) {
    %c0_i32 = arith.constant 0 : i32
    %c0_i32_0 = arith.constant 0 : i32
    return %arg0, %c0_i32 : i32, i32
  }
  func.func @transform_1(%arg0: i32) -> (i32, i32) {
    %c0_i32 = arith.constant 0 : i32
    %c0_i32_0 = arith.constant 0 : i32
    %c0_i32_1 = arith.constant 0 : i32
    return %c0_i32, %c0_i32_0 : i32, i32
  }
  func.func @transform_2(%arg0: i32) -> (i32, i32) {
    %c0_i32 = arith.constant 0 : i32
    %c0_i32_0 = arith.constant 0 : i32
    %c0_i32_1 = arith.constant 0 : i32
    return %c0_i32, %c0_i32_0 : i32, i32
  }
  func.func @transform_3(%arg0: i32) -> (i32, i32) {
    %c0_i32 = arith.constant 0 : i32
    %c0_i32_0 = arith.constant 0 : i32
    %c0_i32_1 = arith.constant 0 : i32
    return %c0_i32, %c0_i32_0 : i32, i32
  }
  func.func @transform_4(%arg0: i32) -> (i32, i32) {
    %c0_i32 = arith.constant 0 : i32
    %c0_i32_0 = arith.constant 0 : i32
    return %arg0, %c0_i32 : i32, i32
  }
}

module attributes {stable_mosaic.version = 11 : i64} {
  func.func @_matmul_bn_res_kernel(%arg0: i32, %arg1: memref<16x64xbf16, #tpu.memory_space<vmem>>, %arg2: memref<64x8xbf16, #tpu.memory_space<vmem>>, %arg3: memref<1x8xf32, #tpu.memory_space<vmem>>, %arg4: memref<1x8xf32, #tpu.memory_space<vmem>>, %arg5: memref<16x8xf32, #tpu.memory_space<vmem>>, %arg6: memref<16x8xf32, #tpu.memory_space<vmem>>) attributes {dimension_semantics = [#tpu.dimension_semantics<parallel>], iteration_bounds = array<i64: 1>, scalar_prefetch = 0 : i64, scratch_operands = 0 : i64, tpu.core_type = #tpu.core_type<tc>, window_params = [{transform_indices = @transform_0, window_bounds = array<i64: 16, 64>}, {pipeline_mode = #tpu.pipeline_mode<synchronous>, transform_indices = @transform_1, window_bounds = array<i64: 64, 8>}, {pipeline_mode = #tpu.pipeline_mode<synchronous>, transform_indices = @transform_2, window_bounds = array<i64: 1, 8>}, {pipeline_mode = #tpu.pipeline_mode<synchronous>, transform_indices = @transform_3, window_bounds = array<i64: 1, 8>}, {transform_indices = @transform_4, window_bounds = array<i64: 16, 8>}, {transform_indices = @transform_5, window_bounds = array<i64: 16, 8>}]} {
    %c0 = arith.constant 0 : index
    %c0_0 = arith.constant 0 : index
    %0 = vector.load %arg1[%c0, %c0_0] : memref<16x64xbf16, #tpu.memory_space<vmem>>, vector<16x64xbf16>
    %c0_1 = arith.constant 0 : index
    %c0_2 = arith.constant 0 : index
    %1 = vector.load %arg2[%c0_1, %c0_2] : memref<64x8xbf16, #tpu.memory_space<vmem>>, vector<64x8xbf16>
    %cst = arith.constant dense<0.000000e+00> : vector<16x8xf32>
    %2 = tpu.matmul %0, %1, %cst {dimension_numbers = #tpu.dot_dimension_numbers<[1], [0], [0], [1], [0, 0, 1, 1], [], []>} : vector<16x64xbf16>, vector<64x8xbf16>, vector<16x8xf32> -> vector<16x8xf32>
    %c0_3 = arith.constant 0 : index
    %c0_4 = arith.constant 0 : index
    %3 = vector.load %arg3[%c0_3, %c0_4] : memref<1x8xf32, #tpu.memory_space<vmem>>, vector<1x8xf32>
    %4 = vector.broadcast %3 : vector<1x8xf32> to vector<16x8xf32>
    %5 = arith.mulf %2, %4 : vector<16x8xf32>
    %c0_5 = arith.constant 0 : index
    %c0_6 = arith.constant 0 : index
    %6 = vector.load %arg4[%c0_5, %c0_6] : memref<1x8xf32, #tpu.memory_space<vmem>>, vector<1x8xf32>
    %7 = vector.broadcast %6 : vector<1x8xf32> to vector<16x8xf32>
    %8 = arith.addf %5, %7 : vector<16x8xf32>
    %c0_7 = arith.constant 0 : index
    %c0_8 = arith.constant 0 : index
    %9 = vector.load %arg5[%c0_7, %c0_8] : memref<16x8xf32, #tpu.memory_space<vmem>>, vector<16x8xf32>
    %10 = arith.addf %8, %9 : vector<16x8xf32>
    %cst_9 = arith.constant 0.000000e+00 : f32
    %11 = vector.broadcast %cst_9 : f32 to vector<16x8xf32>
    %12 = arith.maximumf %10, %11 : vector<16x8xf32>
    %c0_10 = arith.constant 0 : index
    %c0_11 = arith.constant 0 : index
    %13 = vector.load %arg6[%c0_10, %c0_11] : memref<16x8xf32, #tpu.memory_space<vmem>>, vector<16x8xf32>
    tpu.vector_store %arg6[%c0_10, %c0_11], %12 {strides = array<i32>} : memref<16x8xf32, #tpu.memory_space<vmem>>, vector<16x8xf32>,
    return
  }
  func.func @transform_0(%arg0: i32) -> (i32, i32) {
    %c0_i32 = arith.constant 0 : i32
    %c0_i32_0 = arith.constant 0 : i32
    return %arg0, %c0_i32 : i32, i32
  }
  func.func @transform_1(%arg0: i32) -> (i32, i32) {
    %c0_i32 = arith.constant 0 : i32
    %c0_i32_0 = arith.constant 0 : i32
    %c0_i32_1 = arith.constant 0 : i32
    return %c0_i32, %c0_i32_0 : i32, i32
  }
  func.func @transform_2(%arg0: i32) -> (i32, i32) {
    %c0_i32 = arith.constant 0 : i32
    %c0_i32_0 = arith.constant 0 : i32
    %c0_i32_1 = arith.constant 0 : i32
    return %c0_i32, %c0_i32_0 : i32, i32
  }
  func.func @transform_3(%arg0: i32) -> (i32, i32) {
    %c0_i32 = arith.constant 0 : i32
    %c0_i32_0 = arith.constant 0 : i32
    %c0_i32_1 = arith.constant 0 : i32
    return %c0_i32, %c0_i32_0 : i32, i32
  }
  func.func @transform_4(%arg0: i32) -> (i32, i32) {
    %c0_i32 = arith.constant 0 : i32
    %c0_i32_0 = arith.constant 0 : i32
    return %arg0, %c0_i32 : i32, i32
  }
  func.func @transform_5(%arg0: i32) -> (i32, i32) {
    %c0_i32 = arith.constant 0 : i32
    %c0_i32_0 = arith.constant 0 : i32
    return %arg0, %c0_i32 : i32, i32
  }
}

module attributes {stable_mosaic.version = 11 : i64} {
  func.func @_matmul_bn_res_kernel(%arg0: i32, %arg1: memref<16x32xbf16, #tpu.memory_space<vmem>>, %arg2: memref<32x8xbf16, #tpu.memory_space<vmem>>, %arg3: memref<1x8xf32, #tpu.memory_space<vmem>>, %arg4: memref<1x8xf32, #tpu.memory_space<vmem>>, %arg5: memref<16x8xf32, #tpu.memory_space<vmem>>, %arg6: memref<16x8xf32, #tpu.memory_space<vmem>>) attributes {dimension_semantics = [#tpu.dimension_semantics<parallel>], iteration_bounds = array<i64: 1>, scalar_prefetch = 0 : i64, scratch_operands = 0 : i64, tpu.core_type = #tpu.core_type<tc>, window_params = [{transform_indices = @transform_0, window_bounds = array<i64: 16, 32>}, {pipeline_mode = #tpu.pipeline_mode<synchronous>, transform_indices = @transform_1, window_bounds = array<i64: 32, 8>}, {pipeline_mode = #tpu.pipeline_mode<synchronous>, transform_indices = @transform_2, window_bounds = array<i64: 1, 8>}, {pipeline_mode = #tpu.pipeline_mode<synchronous>, transform_indices = @transform_3, window_bounds = array<i64: 1, 8>}, {transform_indices = @transform_4, window_bounds = array<i64: 16, 8>}, {transform_indices = @transform_5, window_bounds = array<i64: 16, 8>}]} {
    %c0 = arith.constant 0 : index
    %c0_0 = arith.constant 0 : index
    %0 = vector.load %arg1[%c0, %c0_0] : memref<16x32xbf16, #tpu.memory_space<vmem>>, vector<16x32xbf16>
    %c0_1 = arith.constant 0 : index
    %c0_2 = arith.constant 0 : index
    %1 = vector.load %arg2[%c0_1, %c0_2] : memref<32x8xbf16, #tpu.memory_space<vmem>>, vector<32x8xbf16>
    %cst = arith.constant dense<0.000000e+00> : vector<16x8xf32>
    %2 = tpu.matmul %0, %1, %cst {dimension_numbers = #tpu.dot_dimension_numbers<[1], [0], [0], [1], [0, 0, 1, 1], [], []>} : vector<16x32xbf16>, vector<32x8xbf16>, vector<16x8xf32> -> vector<16x8xf32>
    %c0_3 = arith.constant 0 : index
    %c0_4 = arith.constant 0 : index
    %3 = vector.load %arg3[%c0_3, %c0_4] : memref<1x8xf32, #tpu.memory_space<vmem>>, vector<1x8xf32>
    %4 = vector.broadcast %3 : vector<1x8xf32> to vector<16x8xf32>
    %5 = arith.mulf %2, %4 : vector<16x8xf32>
    %c0_5 = arith.constant 0 : index
    %c0_6 = arith.constant 0 : index
    %6 = vector.load %arg4[%c0_5, %c0_6] : memref<1x8xf32, #tpu.memory_space<vmem>>, vector<1x8xf32>
    %7 = vector.broadcast %6 : vector<1x8xf32> to vector<16x8xf32>
    %8 = arith.addf %5, %7 : vector<16x8xf32>
    %c0_7 = arith.constant 0 : index
    %c0_8 = arith.constant 0 : index
    %9 = vector.load %arg5[%c0_7, %c0_8] : memref<16x8xf32, #tpu.memory_space<vmem>>, vector<16x8xf32>
    %10 = arith.addf %8, %9 : vector<16x8xf32>
    %cst_9 = arith.constant 0.000000e+00 : f32
    %11 = vector.broadcast %cst_9 : f32 to vector<16x8xf32>
    %12 = arith.maximumf %10, %11 : vector<16x8xf32>
    %c0_10 = arith.constant 0 : index
    %c0_11 = arith.constant 0 : index
    %13 = vector.load %arg6[%c0_10, %c0_11] : memref<16x8xf32, #tpu.memory_space<vmem>>, vector<16x8xf32>
    tpu.vector_store %arg6[%c0_10, %c0_11], %12 {strides = array<i32>} : memref<16x8xf32, #tpu.memory_space<vmem>>, vector<16x8xf32>,
    return
  }
  func.func @transform_0(%arg0: i32) -> (i32, i32) {
    %c0_i32 = arith.constant 0 : i32
    %c0_i32_0 = arith.constant 0 : i32
    return %arg0, %c0_i32 : i32, i32
  }
  func.func @transform_1(%arg0: i32) -> (i32, i32) {
    %c0_i32 = arith.constant 0 : i32
    %c0_i32_0 = arith.constant 0 : i32
    %c0_i32_1 = arith.constant 0 : i32
    return %c0_i32, %c0_i32_0 : i32, i32
  }
  func.func @transform_2(%arg0: i32) -> (i32, i32) {
    %c0_i32 = arith.constant 0 : i32
    %c0_i32_0 = arith.constant 0 : i32
    %c0_i32_1 = arith.constant 0 : i32
    return %c0_i32, %c0_i32_0 : i32, i32
  }
  func.func @transform_3(%arg0: i32) -> (i32, i32) {
    %c0_i32 = arith.constant 0 : i32
    %c0_i32_0 = arith.constant 0 : i32
    %c0_i32_1 = arith.constant 0 : i32
    return %c0_i32, %c0_i32_0 : i32, i32
  }
  func.func @transform_4(%arg0: i32) -> (i32, i32) {
    %c0_i32 = arith.constant 0 : i32
    %c0_i32_0 = arith.constant 0 : i32
    return %arg0, %c0_i32 : i32, i32
  }
  func.func @transform_5(%arg0: i32) -> (i32, i32) {
    %c0_i32 = arith.constant 0 : i32
    %c0_i32_0 = arith.constant 0 : i32
    return %arg0, %c0_i32 : i32, i32
  }
}

module attributes {stable_mosaic.version = 11 : i64} {
  func.func @_matmul_bn_res_kernel(%arg0: i32, %arg1: memref<16x16xbf16, #tpu.memory_space<vmem>>, %arg2: memref<16x8xbf16, #tpu.memory_space<vmem>>, %arg3: memref<1x8xf32, #tpu.memory_space<vmem>>, %arg4: memref<1x8xf32, #tpu.memory_space<vmem>>, %arg5: memref<16x8xf32, #tpu.memory_space<vmem>>, %arg6: memref<16x8xf32, #tpu.memory_space<vmem>>) attributes {dimension_semantics = [#tpu.dimension_semantics<parallel>], iteration_bounds = array<i64: 1>, scalar_prefetch = 0 : i64, scratch_operands = 0 : i64, tpu.core_type = #tpu.core_type<tc>, window_params = [{transform_indices = @transform_0, window_bounds = array<i64: 16, 16>}, {pipeline_mode = #tpu.pipeline_mode<synchronous>, transform_indices = @transform_1, window_bounds = array<i64: 16, 8>}, {pipeline_mode = #tpu.pipeline_mode<synchronous>, transform_indices = @transform_2, window_bounds = array<i64: 1, 8>}, {pipeline_mode = #tpu.pipeline_mode<synchronous>, transform_indices = @transform_3, window_bounds = array<i64: 1, 8>}, {transform_indices = @transform_4, window_bounds = array<i64: 16, 8>}, {transform_indices = @transform_5, window_bounds = array<i64: 16, 8>}]} {
    %c0 = arith.constant 0 : index
    %c0_0 = arith.constant 0 : index
    %0 = vector.load %arg1[%c0, %c0_0] : memref<16x16xbf16, #tpu.memory_space<vmem>>, vector<16x16xbf16>
    %c0_1 = arith.constant 0 : index
    %c0_2 = arith.constant 0 : index
    %1 = vector.load %arg2[%c0_1, %c0_2] : memref<16x8xbf16, #tpu.memory_space<vmem>>, vector<16x8xbf16>
    %cst = arith.constant dense<0.000000e+00> : vector<16x8xf32>
    %2 = tpu.matmul %0, %1, %cst {dimension_numbers = #tpu.dot_dimension_numbers<[1], [0], [0], [1], [0, 0, 1, 1], [], []>} : vector<16x16xbf16>, vector<16x8xbf16>, vector<16x8xf32> -> vector<16x8xf32>
    %c0_3 = arith.constant 0 : index
    %c0_4 = arith.constant 0 : index
    %3 = vector.load %arg3[%c0_3, %c0_4] : memref<1x8xf32, #tpu.memory_space<vmem>>, vector<1x8xf32>
    %4 = vector.broadcast %3 : vector<1x8xf32> to vector<16x8xf32>
    %5 = arith.mulf %2, %4 : vector<16x8xf32>
    %c0_5 = arith.constant 0 : index
    %c0_6 = arith.constant 0 : index
    %6 = vector.load %arg4[%c0_5, %c0_6] : memref<1x8xf32, #tpu.memory_space<vmem>>, vector<1x8xf32>
    %7 = vector.broadcast %6 : vector<1x8xf32> to vector<16x8xf32>
    %8 = arith.addf %5, %7 : vector<16x8xf32>
    %c0_7 = arith.constant 0 : index
    %c0_8 = arith.constant 0 : index
    %9 = vector.load %arg5[%c0_7, %c0_8] : memref<16x8xf32, #tpu.memory_space<vmem>>, vector<16x8xf32>
    %10 = arith.addf %8, %9 : vector<16x8xf32>
    %cst_9 = arith.constant 0.000000e+00 : f32
    %11 = vector.broadcast %cst_9 : f32 to vector<16x8xf32>
    %12 = arith.maximumf %10, %11 : vector<16x8xf32>
    %c0_10 = arith.constant 0 : index
    %c0_11 = arith.constant 0 : index
    %13 = vector.load %arg6[%c0_10, %c0_11] : memref<16x8xf32, #tpu.memory_space<vmem>>, vector<16x8xf32>
    tpu.vector_store %arg6[%c0_10, %c0_11], %12 {strides = array<i32>} : memref<16x8xf32, #tpu.memory_space<vmem>>, vector<16x8xf32>,
    return
  }
  func.func @transform_0(%arg0: i32) -> (i32, i32) {
    %c0_i32 = arith.constant 0 : i32
    %c0_i32_0 = arith.constant 0 : i32
    return %arg0, %c0_i32 : i32, i32
  }
  func.func @transform_1(%arg0: i32) -> (i32, i32) {
    %c0_i32 = arith.constant 0 : i32
    %c0_i32_0 = arith.constant 0 : i32
    %c0_i32_1 = arith.constant 0 : i32
    return %c0_i32, %c0_i32_0 : i32, i32
  }
  func.func @transform_2(%arg0: i32) -> (i32, i32) {
    %c0_i32 = arith.constant 0 : i32
    %c0_i32_0 = arith.constant 0 : i32
    %c0_i32_1 = arith.constant 0 : i32
    return %c0_i32, %c0_i32_0 : i32, i32
  }
  func.func @transform_3(%arg0: i32) -> (i32, i32) {
    %c0_i32 = arith.constant 0 : i32
    %c0_i32_0 = arith.constant 0 : i32
    %c0_i32_1 = arith.constant 0 : i32
    return %c0_i32, %c0_i32_0 : i32, i32
  }
  func.func @transform_4(%arg0: i32) -> (i32, i32) {
    %c0_i32 = arith.constant 0 : i32
    %c0_i32_0 = arith.constant 0 : i32
    return %arg0, %c0_i32 : i32, i32
  }
  func.func @transform_5(%arg0: i32) -> (i32, i32) {
    %c0_i32 = arith.constant 0 : i32
    %c0_i32_0 = arith.constant 0 : i32
    return %arg0, %c0_i32 : i32, i32
  }
}

module attributes {stable_mosaic.version = 11 : i64} {
  func.func @_matmul_bn_res_kernel(%arg0: i32, %arg1: memref<16x8xbf16, #tpu.memory_space<vmem>>, %arg2: memref<8x8xbf16, #tpu.memory_space<vmem>>, %arg3: memref<1x8xf32, #tpu.memory_space<vmem>>, %arg4: memref<1x8xf32, #tpu.memory_space<vmem>>, %arg5: memref<16x8xf32, #tpu.memory_space<vmem>>, %arg6: memref<16x8xf32, #tpu.memory_space<vmem>>) attributes {dimension_semantics = [#tpu.dimension_semantics<parallel>], iteration_bounds = array<i64: 1>, scalar_prefetch = 0 : i64, scratch_operands = 0 : i64, tpu.core_type = #tpu.core_type<tc>, window_params = [{transform_indices = @transform_0, window_bounds = array<i64: 16, 8>}, {pipeline_mode = #tpu.pipeline_mode<synchronous>, transform_indices = @transform_1, window_bounds = array<i64: 8, 8>}, {pipeline_mode = #tpu.pipeline_mode<synchronous>, transform_indices = @transform_2, window_bounds = array<i64: 1, 8>}, {pipeline_mode = #tpu.pipeline_mode<synchronous>, transform_indices = @transform_3, window_bounds = array<i64: 1, 8>}, {transform_indices = @transform_4, window_bounds = array<i64: 16, 8>}, {transform_indices = @transform_5, window_bounds = array<i64: 16, 8>}]} {
    %c0 = arith.constant 0 : index
    %c0_0 = arith.constant 0 : index
    %0 = vector.load %arg1[%c0, %c0_0] : memref<16x8xbf16, #tpu.memory_space<vmem>>, vector<16x8xbf16>
    %c0_1 = arith.constant 0 : index
    %c0_2 = arith.constant 0 : index
    %1 = vector.load %arg2[%c0_1, %c0_2] : memref<8x8xbf16, #tpu.memory_space<vmem>>, vector<8x8xbf16>
    %cst = arith.constant dense<0.000000e+00> : vector<16x8xf32>
    %2 = tpu.matmul %0, %1, %cst {dimension_numbers = #tpu.dot_dimension_numbers<[1], [0], [0], [1], [0, 0, 1, 1], [], []>} : vector<16x8xbf16>, vector<8x8xbf16>, vector<16x8xf32> -> vector<16x8xf32>
    %c0_3 = arith.constant 0 : index
    %c0_4 = arith.constant 0 : index
    %3 = vector.load %arg3[%c0_3, %c0_4] : memref<1x8xf32, #tpu.memory_space<vmem>>, vector<1x8xf32>
    %4 = vector.broadcast %3 : vector<1x8xf32> to vector<16x8xf32>
    %5 = arith.mulf %2, %4 : vector<16x8xf32>
    %c0_5 = arith.constant 0 : index
    %c0_6 = arith.constant 0 : index
    %6 = vector.load %arg4[%c0_5, %c0_6] : memref<1x8xf32, #tpu.memory_space<vmem>>, vector<1x8xf32>
    %7 = vector.broadcast %6 : vector<1x8xf32> to vector<16x8xf32>
    %8 = arith.addf %5, %7 : vector<16x8xf32>
    %c0_7 = arith.constant 0 : index
    %c0_8 = arith.constant 0 : index
    %9 = vector.load %arg5[%c0_7, %c0_8] : memref<16x8xf32, #tpu.memory_space<vmem>>, vector<16x8xf32>
    %10 = arith.addf %8, %9 : vector<16x8xf32>
    %cst_9 = arith.constant 0.000000e+00 : f32
    %11 = vector.broadcast %cst_9 : f32 to vector<16x8xf32>
    %12 = arith.maximumf %10, %11 : vector<16x8xf32>
    %c0_10 = arith.constant 0 : index
    %c0_11 = arith.constant 0 : index
    %13 = vector.load %arg6[%c0_10, %c0_11] : memref<16x8xf32, #tpu.memory_space<vmem>>, vector<16x8xf32>
    tpu.vector_store %arg6[%c0_10, %c0_11], %12 {strides = array<i32>} : memref<16x8xf32, #tpu.memory_space<vmem>>, vector<16x8xf32>,
    return
  }
  func.func @transform_0(%arg0: i32) -> (i32, i32) {
    %c0_i32 = arith.constant 0 : i32
    %c0_i32_0 = arith.constant 0 : i32
    return %arg0, %c0_i32 : i32, i32
  }
  func.func @transform_1(%arg0: i32) -> (i32, i32) {
    %c0_i32 = arith.constant 0 : i32
    %c0_i32_0 = arith.constant 0 : i32
    %c0_i32_1 = arith.constant 0 : i32
    return %c0_i32, %c0_i32_0 : i32, i32
  }
  func.func @transform_2(%arg0: i32) -> (i32, i32) {
    %c0_i32 = arith.constant 0 : i32
    %c0_i32_0 = arith.constant 0 : i32
    %c0_i32_1 = arith.constant 0 : i32
    return %c0_i32, %c0_i32_0 : i32, i32
  }
  func.func @transform_3(%arg0: i32) -> (i32, i32) {
    %c0_i32 = arith.constant 0 : i32
    %c0_i32_0 = arith.constant 0 : i32
    %c0_i32_1 = arith.constant 0 : i32
    return %c0_i32, %c0_i32_0 : i32, i32
  }
  func.func @transform_4(%arg0: i32) -> (i32, i32) {
    %c0_i32 = arith.constant 0 : i32
    %c0_i32_0 = arith.constant 0 : i32
    return %arg0, %c0_i32 : i32, i32
  }
  func.func @transform_5(%arg0: i32) -> (i32, i32) {
    %c0_i32 = arith.constant 0 : i32
    %c0_i32_0 = arith.constant 0 : i32
    return %arg0, %c0_i32 : i32, i32
  }
}

module attributes {stable_mosaic.version = 11 : i64} {
  func.func @_matmul_bn_kernel(%arg0: i32, %arg1: memref<64x64xbf16, #tpu.memory_space<vmem>>, %arg2: memref<64x4xbf16, #tpu.memory_space<vmem>>, %arg3: memref<1x4xf32, #tpu.memory_space<vmem>>, %arg4: memref<1x4xf32, #tpu.memory_space<vmem>>, %arg5: memref<64x4xf32, #tpu.memory_space<vmem>>) attributes {dimension_semantics = [#tpu.dimension_semantics<parallel>], iteration_bounds = array<i64: 1>, scalar_prefetch = 0 : i64, scratch_operands = 0 : i64, tpu.core_type = #tpu.core_type<tc>, window_params = [{transform_indices = @transform_0, window_bounds = array<i64: 64, 64>}, {pipeline_mode = #tpu.pipeline_mode<synchronous>, transform_indices = @transform_1, window_bounds = array<i64: 64, 4>}, {pipeline_mode = #tpu.pipeline_mode<synchronous>, transform_indices = @transform_2, window_bounds = array<i64: 1, 4>}, {pipeline_mode = #tpu.pipeline_mode<synchronous>, transform_indices = @transform_3, window_bounds = array<i64: 1, 4>}, {transform_indices = @transform_4, window_bounds = array<i64: 64, 4>}]} {
    %c0 = arith.constant 0 : index
    %c0_0 = arith.constant 0 : index
    %0 = vector.load %arg1[%c0, %c0_0] : memref<64x64xbf16, #tpu.memory_space<vmem>>, vector<64x64xbf16>
    %c0_1 = arith.constant 0 : index
    %c0_2 = arith.constant 0 : index
    %1 = vector.load %arg2[%c0_1, %c0_2] : memref<64x4xbf16, #tpu.memory_space<vmem>>, vector<64x4xbf16>
    %cst = arith.constant dense<0.000000e+00> : vector<64x4xf32>
    %2 = tpu.matmul %0, %1, %cst {dimension_numbers = #tpu.dot_dimension_numbers<[1], [0], [0], [1], [0, 0, 1, 1], [], []>} : vector<64x64xbf16>, vector<64x4xbf16>, vector<64x4xf32> -> vector<64x4xf32>
    %c0_3 = arith.constant 0 : index
    %c0_4 = arith.constant 0 : index
    %3 = vector.load %arg3[%c0_3, %c0_4] : memref<1x4xf32, #tpu.memory_space<vmem>>, vector<1x4xf32>
    %4 = vector.broadcast %3 : vector<1x4xf32> to vector<64x4xf32>
    %5 = arith.mulf %2, %4 : vector<64x4xf32>
    %c0_5 = arith.constant 0 : index
    %c0_6 = arith.constant 0 : index
    %6 = vector.load %arg4[%c0_5, %c0_6] : memref<1x4xf32, #tpu.memory_space<vmem>>, vector<1x4xf32>
    %7 = vector.broadcast %6 : vector<1x4xf32> to vector<64x4xf32>
    %8 = arith.addf %5, %7 : vector<64x4xf32>
    %c0_7 = arith.constant 0 : index
    %c0_8 = arith.constant 0 : index
    %9 = vector.load %arg5[%c0_7, %c0_8] : memref<64x4xf32, #tpu.memory_space<vmem>>, vector<64x4xf32>
    tpu.vector_store %arg5[%c0_7, %c0_8], %8 {strides = array<i32>} : memref<64x4xf32, #tpu.memory_space<vmem>>, vector<64x4xf32>,
    return
  }
  func.func @transform_0(%arg0: i32) -> (i32, i32) {
    %c0_i32 = arith.constant 0 : i32
    %c0_i32_0 = arith.constant 0 : i32
    return %arg0, %c0_i32 : i32, i32
  }
  func.func @transform_1(%arg0: i32) -> (i32, i32) {
    %c0_i32 = arith.constant 0 : i32
    %c0_i32_0 = arith.constant 0 : i32
    %c0_i32_1 = arith.constant 0 : i32
    return %c0_i32, %c0_i32_0 : i32, i32
  }
  func.func @transform_2(%arg0: i32) -> (i32, i32) {
    %c0_i32 = arith.constant 0 : i32
    %c0_i32_0 = arith.constant 0 : i32
    %c0_i32_1 = arith.constant 0 : i32
    return %c0_i32, %c0_i32_0 : i32, i32
  }
  func.func @transform_3(%arg0: i32) -> (i32, i32) {
    %c0_i32 = arith.constant 0 : i32
    %c0_i32_0 = arith.constant 0 : i32
    %c0_i32_1 = arith.constant 0 : i32
    return %c0_i32, %c0_i32_0 : i32, i32
  }
  func.func @transform_4(%arg0: i32) -> (i32, i32) {
    %c0_i32 = arith.constant 0 : i32
    %c0_i32_0 = arith.constant 0 : i32
    return %arg0, %c0_i32 : i32, i32
  }
}

module attributes {stable_mosaic.version = 11 : i64} {
  func.func @_matmul_bn_kernel(%arg0: i32, %arg1: memref<64x32xbf16, #tpu.memory_space<vmem>>, %arg2: memref<32x4xbf16, #tpu.memory_space<vmem>>, %arg3: memref<1x4xf32, #tpu.memory_space<vmem>>, %arg4: memref<1x4xf32, #tpu.memory_space<vmem>>, %arg5: memref<64x4xf32, #tpu.memory_space<vmem>>) attributes {dimension_semantics = [#tpu.dimension_semantics<parallel>], iteration_bounds = array<i64: 1>, scalar_prefetch = 0 : i64, scratch_operands = 0 : i64, tpu.core_type = #tpu.core_type<tc>, window_params = [{transform_indices = @transform_0, window_bounds = array<i64: 64, 32>}, {pipeline_mode = #tpu.pipeline_mode<synchronous>, transform_indices = @transform_1, window_bounds = array<i64: 32, 4>}, {pipeline_mode = #tpu.pipeline_mode<synchronous>, transform_indices = @transform_2, window_bounds = array<i64: 1, 4>}, {pipeline_mode = #tpu.pipeline_mode<synchronous>, transform_indices = @transform_3, window_bounds = array<i64: 1, 4>}, {transform_indices = @transform_4, window_bounds = array<i64: 64, 4>}]} {
    %c0 = arith.constant 0 : index
    %c0_0 = arith.constant 0 : index
    %0 = vector.load %arg1[%c0, %c0_0] : memref<64x32xbf16, #tpu.memory_space<vmem>>, vector<64x32xbf16>
    %c0_1 = arith.constant 0 : index
    %c0_2 = arith.constant 0 : index
    %1 = vector.load %arg2[%c0_1, %c0_2] : memref<32x4xbf16, #tpu.memory_space<vmem>>, vector<32x4xbf16>
    %cst = arith.constant dense<0.000000e+00> : vector<64x4xf32>
    %2 = tpu.matmul %0, %1, %cst {dimension_numbers = #tpu.dot_dimension_numbers<[1], [0], [0], [1], [0, 0, 1, 1], [], []>} : vector<64x32xbf16>, vector<32x4xbf16>, vector<64x4xf32> -> vector<64x4xf32>
    %c0_3 = arith.constant 0 : index
    %c0_4 = arith.constant 0 : index
    %3 = vector.load %arg3[%c0_3, %c0_4] : memref<1x4xf32, #tpu.memory_space<vmem>>, vector<1x4xf32>
    %4 = vector.broadcast %3 : vector<1x4xf32> to vector<64x4xf32>
    %5 = arith.mulf %2, %4 : vector<64x4xf32>
    %c0_5 = arith.constant 0 : index
    %c0_6 = arith.constant 0 : index
    %6 = vector.load %arg4[%c0_5, %c0_6] : memref<1x4xf32, #tpu.memory_space<vmem>>, vector<1x4xf32>
    %7 = vector.broadcast %6 : vector<1x4xf32> to vector<64x4xf32>
    %8 = arith.addf %5, %7 : vector<64x4xf32>
    %c0_7 = arith.constant 0 : index
    %c0_8 = arith.constant 0 : index
    %9 = vector.load %arg5[%c0_7, %c0_8] : memref<64x4xf32, #tpu.memory_space<vmem>>, vector<64x4xf32>
    tpu.vector_store %arg5[%c0_7, %c0_8], %8 {strides = array<i32>} : memref<64x4xf32, #tpu.memory_space<vmem>>, vector<64x4xf32>,
    return
  }
  func.func @transform_0(%arg0: i32) -> (i32, i32) {
    %c0_i32 = arith.constant 0 : i32
    %c0_i32_0 = arith.constant 0 : i32
    return %arg0, %c0_i32 : i32, i32
  }
  func.func @transform_1(%arg0: i32) -> (i32, i32) {
    %c0_i32 = arith.constant 0 : i32
    %c0_i32_0 = arith.constant 0 : i32
    %c0_i32_1 = arith.constant 0 : i32
    return %c0_i32, %c0_i32_0 : i32, i32
  }
  func.func @transform_2(%arg0: i32) -> (i32, i32) {
    %c0_i32 = arith.constant 0 : i32
    %c0_i32_0 = arith.constant 0 : i32
    %c0_i32_1 = arith.constant 0 : i32
    return %c0_i32, %c0_i32_0 : i32, i32
  }
  func.func @transform_3(%arg0: i32) -> (i32, i32) {
    %c0_i32 = arith.constant 0 : i32
    %c0_i32_0 = arith.constant 0 : i32
    %c0_i32_1 = arith.constant 0 : i32
    return %c0_i32, %c0_i32_0 : i32, i32
  }
  func.func @transform_4(%arg0: i32) -> (i32, i32) {
    %c0_i32 = arith.constant 0 : i32
    %c0_i32_0 = arith.constant 0 : i32
    return %arg0, %c0_i32 : i32, i32
  }
}

module attributes {stable_mosaic.version = 11 : i64} {
  func.func @_matmul_bn_kernel(%arg0: i32, %arg1: memref<64x16xbf16, #tpu.memory_space<vmem>>, %arg2: memref<16x4xbf16, #tpu.memory_space<vmem>>, %arg3: memref<1x4xf32, #tpu.memory_space<vmem>>, %arg4: memref<1x4xf32, #tpu.memory_space<vmem>>, %arg5: memref<64x4xf32, #tpu.memory_space<vmem>>) attributes {dimension_semantics = [#tpu.dimension_semantics<parallel>], iteration_bounds = array<i64: 1>, scalar_prefetch = 0 : i64, scratch_operands = 0 : i64, tpu.core_type = #tpu.core_type<tc>, window_params = [{transform_indices = @transform_0, window_bounds = array<i64: 64, 16>}, {pipeline_mode = #tpu.pipeline_mode<synchronous>, transform_indices = @transform_1, window_bounds = array<i64: 16, 4>}, {pipeline_mode = #tpu.pipeline_mode<synchronous>, transform_indices = @transform_2, window_bounds = array<i64: 1, 4>}, {pipeline_mode = #tpu.pipeline_mode<synchronous>, transform_indices = @transform_3, window_bounds = array<i64: 1, 4>}, {transform_indices = @transform_4, window_bounds = array<i64: 64, 4>}]} {
    %c0 = arith.constant 0 : index
    %c0_0 = arith.constant 0 : index
    %0 = vector.load %arg1[%c0, %c0_0] : memref<64x16xbf16, #tpu.memory_space<vmem>>, vector<64x16xbf16>
    %c0_1 = arith.constant 0 : index
    %c0_2 = arith.constant 0 : index
    %1 = vector.load %arg2[%c0_1, %c0_2] : memref<16x4xbf16, #tpu.memory_space<vmem>>, vector<16x4xbf16>
    %cst = arith.constant dense<0.000000e+00> : vector<64x4xf32>
    %2 = tpu.matmul %0, %1, %cst {dimension_numbers = #tpu.dot_dimension_numbers<[1], [0], [0], [1], [0, 0, 1, 1], [], []>} : vector<64x16xbf16>, vector<16x4xbf16>, vector<64x4xf32> -> vector<64x4xf32>
    %c0_3 = arith.constant 0 : index
    %c0_4 = arith.constant 0 : index
    %3 = vector.load %arg3[%c0_3, %c0_4] : memref<1x4xf32, #tpu.memory_space<vmem>>, vector<1x4xf32>
    %4 = vector.broadcast %3 : vector<1x4xf32> to vector<64x4xf32>
    %5 = arith.mulf %2, %4 : vector<64x4xf32>
    %c0_5 = arith.constant 0 : index
    %c0_6 = arith.constant 0 : index
    %6 = vector.load %arg4[%c0_5, %c0_6] : memref<1x4xf32, #tpu.memory_space<vmem>>, vector<1x4xf32>
    %7 = vector.broadcast %6 : vector<1x4xf32> to vector<64x4xf32>
    %8 = arith.addf %5, %7 : vector<64x4xf32>
    %c0_7 = arith.constant 0 : index
    %c0_8 = arith.constant 0 : index
    %9 = vector.load %arg5[%c0_7, %c0_8] : memref<64x4xf32, #tpu.memory_space<vmem>>, vector<64x4xf32>
    tpu.vector_store %arg5[%c0_7, %c0_8], %8 {strides = array<i32>} : memref<64x4xf32, #tpu.memory_space<vmem>>, vector<64x4xf32>,
    return
  }
  func.func @transform_0(%arg0: i32) -> (i32, i32) {
    %c0_i32 = arith.constant 0 : i32
    %c0_i32_0 = arith.constant 0 : i32
    return %arg0, %c0_i32 : i32, i32
  }
  func.func @transform_1(%arg0: i32) -> (i32, i32) {
    %c0_i32 = arith.constant 0 : i32
    %c0_i32_0 = arith.constant 0 : i32
    %c0_i32_1 = arith.constant 0 : i32
    return %c0_i32, %c0_i32_0 : i32, i32
  }
  func.func @transform_2(%arg0: i32) -> (i32, i32) {
    %c0_i32 = arith.constant 0 : i32
    %c0_i32_0 = arith.constant 0 : i32
    %c0_i32_1 = arith.constant 0 : i32
    return %c0_i32, %c0_i32_0 : i32, i32
  }
  func.func @transform_3(%arg0: i32) -> (i32, i32) {
    %c0_i32 = arith.constant 0 : i32
    %c0_i32_0 = arith.constant 0 : i32
    %c0_i32_1 = arith.constant 0 : i32
    return %c0_i32, %c0_i32_0 : i32, i32
  }
  func.func @transform_4(%arg0: i32) -> (i32, i32) {
    %c0_i32 = arith.constant 0 : i32
    %c0_i32_0 = arith.constant 0 : i32
    return %arg0, %c0_i32 : i32, i32
  }
}

module attributes {stable_mosaic.version = 11 : i64} {
  func.func @_matmul_bn_kernel(%arg0: i32, %arg1: memref<64x8xbf16, #tpu.memory_space<vmem>>, %arg2: memref<8x4xbf16, #tpu.memory_space<vmem>>, %arg3: memref<1x4xf32, #tpu.memory_space<vmem>>, %arg4: memref<1x4xf32, #tpu.memory_space<vmem>>, %arg5: memref<64x4xf32, #tpu.memory_space<vmem>>) attributes {dimension_semantics = [#tpu.dimension_semantics<parallel>], iteration_bounds = array<i64: 1>, scalar_prefetch = 0 : i64, scratch_operands = 0 : i64, tpu.core_type = #tpu.core_type<tc>, window_params = [{transform_indices = @transform_0, window_bounds = array<i64: 64, 8>}, {pipeline_mode = #tpu.pipeline_mode<synchronous>, transform_indices = @transform_1, window_bounds = array<i64: 8, 4>}, {pipeline_mode = #tpu.pipeline_mode<synchronous>, transform_indices = @transform_2, window_bounds = array<i64: 1, 4>}, {pipeline_mode = #tpu.pipeline_mode<synchronous>, transform_indices = @transform_3, window_bounds = array<i64: 1, 4>}, {transform_indices = @transform_4, window_bounds = array<i64: 64, 4>}]} {
    %c0 = arith.constant 0 : index
    %c0_0 = arith.constant 0 : index
    %0 = vector.load %arg1[%c0, %c0_0] : memref<64x8xbf16, #tpu.memory_space<vmem>>, vector<64x8xbf16>
    %c0_1 = arith.constant 0 : index
    %c0_2 = arith.constant 0 : index
    %1 = vector.load %arg2[%c0_1, %c0_2] : memref<8x4xbf16, #tpu.memory_space<vmem>>, vector<8x4xbf16>
    %cst = arith.constant dense<0.000000e+00> : vector<64x4xf32>
    %2 = tpu.matmul %0, %1, %cst {dimension_numbers = #tpu.dot_dimension_numbers<[1], [0], [0], [1], [0, 0, 1, 1], [], []>} : vector<64x8xbf16>, vector<8x4xbf16>, vector<64x4xf32> -> vector<64x4xf32>
    %c0_3 = arith.constant 0 : index
    %c0_4 = arith.constant 0 : index
    %3 = vector.load %arg3[%c0_3, %c0_4] : memref<1x4xf32, #tpu.memory_space<vmem>>, vector<1x4xf32>
    %4 = vector.broadcast %3 : vector<1x4xf32> to vector<64x4xf32>
    %5 = arith.mulf %2, %4 : vector<64x4xf32>
    %c0_5 = arith.constant 0 : index
    %c0_6 = arith.constant 0 : index
    %6 = vector.load %arg4[%c0_5, %c0_6] : memref<1x4xf32, #tpu.memory_space<vmem>>, vector<1x4xf32>
    %7 = vector.broadcast %6 : vector<1x4xf32> to vector<64x4xf32>
    %8 = arith.addf %5, %7 : vector<64x4xf32>
    %c0_7 = arith.constant 0 : index
    %c0_8 = arith.constant 0 : index
    %9 = vector.load %arg5[%c0_7, %c0_8] : memref<64x4xf32, #tpu.memory_space<vmem>>, vector<64x4xf32>
    tpu.vector_store %arg5[%c0_7, %c0_8], %8 {strides = array<i32>} : memref<64x4xf32, #tpu.memory_space<vmem>>, vector<64x4xf32>,
    return
  }
  func.func @transform_0(%arg0: i32) -> (i32, i32) {
    %c0_i32 = arith.constant 0 : i32
    %c0_i32_0 = arith.constant 0 : i32
    return %arg0, %c0_i32 : i32, i32
  }
  func.func @transform_1(%arg0: i32) -> (i32, i32) {
    %c0_i32 = arith.constant 0 : i32
    %c0_i32_0 = arith.constant 0 : i32
    %c0_i32_1 = arith.constant 0 : i32
    return %c0_i32, %c0_i32_0 : i32, i32
  }
  func.func @transform_2(%arg0: i32) -> (i32, i32) {
    %c0_i32 = arith.constant 0 : i32
    %c0_i32_0 = arith.constant 0 : i32
    %c0_i32_1 = arith.constant 0 : i32
    return %c0_i32, %c0_i32_0 : i32, i32
  }
  func.func @transform_3(%arg0: i32) -> (i32, i32) {
    %c0_i32 = arith.constant 0 : i32
    %c0_i32_0 = arith.constant 0 : i32
    %c0_i32_1 = arith.constant 0 : i32
    return %c0_i32, %c0_i32_0 : i32, i32
  }
  func.func @transform_4(%arg0: i32) -> (i32, i32) {
    %c0_i32 = arith.constant 0 : i32
    %c0_i32_0 = arith.constant 0 : i32
    return %arg0, %c0_i32 : i32, i32
  }
}

</mosaic_0001>

<bundles_post_ra>
// kernel: hourglass_forward.20
= control target key start
LH: loop header
LB: loop body
LE: loop exit
PB: predicated region body
PF: predicated region fallthrough
CT: control target
= control target key end

     0   :  { %vm101_vm0 = vcmask 883712   ;;  %vm114_vm1 = vcmask 1045504   ;;  %vm221_vm2 = vcmask 64512   ;;  %s411_s1 = inlined_call_operand.vmem [shape: bf16[108,8], index: 1, kind: input, shape index: {}]   ;;  %s412_s0 = inlined_call_operand.vmem [shape: bf16[64,108], index: 0, kind: input, shape index: {}]   ;;  %s413_s2 = inlined_call_operand.vmem [shape: f32[1,8], index: 2, kind: input, shape index: {}]   ;;  %s414_s3 = inlined_call_operand.vmem [shape: f32[1,8], index: 3, kind: input, shape index: {}]   ;;  %s415_s4 = inlined_call_operand.vmem [shape: f32[64,8], index: 4, kind: output, shape index: {}]  }
   0x1   :  { %v300_v0 = vld [vmem:[%s411_s1] sm:$0xff]   ;;  %v301_v1 = vld [vmem:[%s411_s1 + $0x8] sm:$0xff]   ;;  %v302_v2 = vld [vmem:[%s411_s1 + $0x10] sm:$0xff]  }
   0x2   :  { %262 = vmatprep.subr.bf16.mxu0 %v300_v0  ;;  %284 = vmatprep.subr.bf16.mxu1 %v300_v0  ;;  %v303_v3 = vld [vmem:[%s411_s1 + $0x18] sm:$0xff]   ;;  %v307_v4 = vld [vmem:[%s412_s0] sm:$0xff]   ;;  %v308_v5 = vld [vmem:[%s412_s0 + $0x10] sm:$0xff]  }
   0x3   :  { %263 = vmatpush3.bf16.msra.mxu0 %v300_v0  ;;  %291 = vmatpush3.bf16.msra.mxu1 %v300_v0  ;;  %v304_v6 = vld [vmem:[%s411_s1 + $0x20] sm:$0xff]   ;;  %v305_v7 = vld [vmem:[%s411_s1 + $0x28] sm:$0xff]   ;;  %v306_v8 = vld [vmem:[%s411_s1 + $0x30] sm:$0x3f]  }
   0x4   :  { %264 = vmatprep.subr.bf16.mxu0 %v301_v1  ;;  %285 = vmatprep.subr.bf16.mxu1 %v301_v1  ;;  %v116_v9 = vsel %vm114_vm1, %v306_v8, 0  ;;  %v309_v10 = vld [vmem:[%s412_s0 + $0x8] sm:$0xff]   ;;  %v310_v11 = vld [vmem:[%s412_s0 + $0x18] sm:$0xff]   ;;  %v249_v12 = vld [vmem:[%s413_s2] ss:$0 sm:$0xff] }
   0x5   :  { %276 = vmatprep.mubr.msk.bf16.mxu0 %vm101_vm0, %v307_v4  ;;  %280 = vmatprep.mubr.msk.bf16.mxu1 %vm101_vm0, %v308_v5  ;;  %v250_v14 = vld [vmem:[%s414_s3] ss:$0 sm:$0xff] }
   0x7   :  { %265 = vmatpush3.bf16.msra.mxu0 %v301_v1  ;;  %292 = vmatpush3.bf16.msra.mxu1 %v301_v1 }
   0x8   :  { %266 = vmatprep.subr.bf16.mxu0 %v302_v2  ;;  %286 = vmatprep.subr.bf16.mxu1 %v302_v2 }
   0xb   :  { %267 = vmatpush3.bf16.msra.mxu0 %v302_v2  ;;  %293 = vmatpush3.bf16.msra.mxu1 %v302_v2 }
   0xc   :  { %268 = vmatprep.subr.bf16.mxu0 %v303_v3  ;;  %287 = vmatprep.subr.bf16.mxu1 %v303_v3 }
   0xf   :  { %269 = vmatpush3.bf16.msra.mxu0 %v303_v3  ;;  %294 = vmatpush3.bf16.msra.mxu1 %v303_v3 }
  0x10   :  { %270 = vmatprep.subr.bf16.mxu0 %v304_v6  ;;  %288 = vmatprep.subr.bf16.mxu1 %v304_v6 }
  0x13   :  { %271 = vmatpush3.bf16.msra.mxu0 %v304_v6  ;;  %295 = vmatpush3.bf16.msra.mxu1 %v304_v6 }
  0x14   :  { %272 = vmatprep.subr.bf16.mxu0 %v305_v7  ;;  %289 = vmatprep.subr.bf16.mxu1 %v305_v7 }
  0x17   :  { %273 = vmatpush3.bf16.msra.mxu0 %v305_v7  ;;  %296 = vmatpush3.bf16.msra.mxu1 %v305_v7 }
  0x18   :  { %298 = vmatprep.subr.msk.bf16.mxu0 %vm114_vm1, %v306_v8  ;;  %299 = vmatprep.subr.msk.bf16.mxu1 %vm114_vm1, %v306_v8 }
  0x1b   :  { %275 = vmatpush3.bf16.msra.mxu0 %v116_v9  ;;  %297 = vmatpush3.bf16.msra.mxu1 %v116_v9 }
  0x1e   :  { %277 = vmatmul.mubr.msk.bf16.vlgmr.msra.gmra.mrb[0].mxu0 %vm101_vm0, %v309_v10  ;;  %281 = vmatmul.mubr.msk.bf16.vlgmr.msra.gmra.mrb[0].mxu1 %vm101_vm0, %v310_v11 }
  0xf1   :  { %v278_v13 = vpop.f32.mrb[0].mxu0  ;;  %v282_v15 = vpop.f32.mrb[0].mxu1 }
  0xf2   :  { %v192_v16 = vmul.f32 %v278_v13, %v249_v12  ;;  %v196_v17 = vmul.f32 %v282_v15, %v249_v12  ;;  %v152_v18 = vpop.f32.mrb[1].mxu0  ;;  %v168_v19 = vpop.f32.mrb[1].mxu1 }
  0xf3   :  { %v190_v20 = vmul.f32 %v249_v12, %v152_v18  ;;  %v194_v21 = vmul.f32 %v249_v12, %v168_v19  ;;  %v279_v22 = vpop.f32.mrb[2].mxu0  ;;  %v283_v23 = vpop.f32.mrb[2].mxu1 }
  0xf4   :  { %v207_v24 = vadd.f32 %v250_v14, %v192_v16  ;;  %v211_v25 = vadd.f32 %v250_v14, %v196_v17  ;;  %v193_v26 = vmul.f32 %v279_v22, %v249_v12  ;;  %v197_v27 = vmul.f32 %v283_v23, %v249_v12  ;;  %v155_v28 = vpop.f32.mrb[3].mxu0  ;;  %v171_v29 = vpop.f32.mrb[3].mxu1 }
  0xf5   :  { %v205_v30 = vadd.f32 %v250_v14, %v190_v20  ;;  %v209_v31 = vadd.f32 %v250_v14, %v194_v21  ;;  %v191_v32 = vmul.f32 %v249_v12, %v155_v28  ;;  %v195_v33 = vmul.f32 %v249_v12, %v171_v29 }
  0xf6   :  { %v215_v34 = vmax.f32 %v207_v24, 0.0  ;;  %v219_v35 = vmax.f32 %v211_v25, 0.0  ;;  %v208_v36 = vadd.f32 %v250_v14, %v193_v26  ;;  %v212_v37 = vadd.f32 %v250_v14, %v197_v27 }
  0xf7   :  { %v213_v38 = vmax.f32 %v205_v30, 0.0  ;;  %v217_v39 = vmax.f32 %v209_v31, 0.0  ;;  %v206_v40 = vadd.f32 %v250_v14, %v191_v32  ;;  %v210_v41 = vadd.f32 %v250_v14, %v195_v33 }
  0xf8   :  { %224 = vst.msk [vmem:[%s415_s4 + $0x10] sm:$0xff] %vm221_vm2, %v215_v34  ;;  %228 = vst.msk [vmem:[%s415_s4 + $0x30] sm:$0xff] %vm221_vm2, %v219_v35  ;;  %v216_v42 = vmax.f32 %v208_v36, 0.0  ;;  %v220_v43 = vmax.f32 %v212_v37, 0.0 }
  0xf9   :  { %222 = vst.msk [vmem:[%s415_s4] sm:$0xff] %vm221_vm2, %v213_v38  ;;  %226 = vst.msk [vmem:[%s415_s4 + $0x20] sm:$0xff] %vm221_vm2, %v217_v39  ;;  %v214_v44 = vmax.f32 %v206_v40, 0.0  ;;  %v218_v45 = vmax.f32 %v210_v41, 0.0 }
  0xfa   :  { %225 = vst.msk [vmem:[%s415_s4 + $0x18] sm:$0xff] %vm221_vm2, %v216_v42  ;;  %229 = vst.msk [vmem:[%s415_s4 + $0x38] sm:$0xff] %vm221_vm2, %v220_v43 }
  0xfb   :  { %223 = vst.msk [vmem:[%s415_s4 + $0x8] sm:$0xff] %vm221_vm2, %v214_v44  ;;  %227 = vst.msk [vmem:[%s415_s4 + $0x28] sm:$0xff] %vm221_vm2, %v218_v45 }

// kernel: hourglass_forward.21
= control target key start
LH: loop header
LB: loop body
LE: loop exit
PB: predicated region body
PF: predicated region fallthrough
CT: control target
= control target key end

     0   :  { %v386_v0 = vmov 0   ;;  %vm170_vm0 = vcmask 719872   ;;  %vm183_vm1 = vcmask 1043456   ;;  %vm290_vm2 = vcmask 64512   ;;  %s548_s1 = inlined_call_operand.vmem [shape: bf16[216,8], index: 1, kind: input, shape index: {}]   ;;  %s549_s0 = inlined_call_operand.vmem [shape: bf16[64,216], index: 0, kind: input, shape index: {}]   ;;  %s550_s2 = inlined_call_operand.vmem [shape: f32[1,8], index: 2, kind: input, shape index: {}]   ;;  %s551_s3 = inlined_call_operand.vmem [shape: f32[1,8], index: 3, kind: input, shape index: {}]   ;;  %s552_s4 = inlined_call_operand.vmem [shape: f32[64,8], index: 4, kind: output, shape index: {}]  }
   0x1   :  { %187 = vmatprep.subr.bf16.mxu0 %v386_v0  ;;  %331 = vmatprep.subr.bf16.mxu1 %v386_v0  ;;  %v360_v1 = vld [vmem:[%s548_s1] sm:$0xff]   ;;  %v361_v2 = vld [vmem:[%s548_s1 + $0x8] sm:$0xff]   ;;  %v362_v3 = vld [vmem:[%s548_s1 + $0x10] sm:$0xff]  }
   0x2   :  { %188 = vmatpush1.bf16.msra.mxu0 %v360_v1  ;;  %345 = vmatpush1.bf16.msra.mxu1 %v360_v1  ;;  %v363_v4 = vld [vmem:[%s548_s1 + $0x18] sm:$0xff]   ;;  %v364_v5 = vld [vmem:[%s548_s1 + $0x20] sm:$0xff]   ;;  %v365_v8 = vld [vmem:[%s548_s1 + $0x28] sm:$0xff]  }
   0x3   :  { %189 = vmatprep.subr.bf16.mxu0 %v386_v0  ;;  %332 = vmatprep.subr.bf16.mxu1 %v386_v0  ;;  %v376_v6 = vld [vmem:[%s549_s0 + $0x4] ss:$8 sps:$4 sm:$0xff]   ;;  %v366_v9 = vld [vmem:[%s548_s1 + $0x30] sm:$0xff]   ;;  %v367_v10 = vld [vmem:[%s548_s1 + $0x38] sm:$0xff]  }
   0x4   :  { %325 = vmatprep.mubr.msk.bf16.mxu0 %vm170_vm0, %v376_v6  ;;  %v379_v7 = vld [vmem:[%s549_s0 + $0x24] ss:$8 sps:$4 sm:$0xff]   ;;  %v370_v13 = vld [vmem:[%s548_s1 + $0x50] sm:$0xff]   ;;  %v371_v14 = vld [vmem:[%s548_s1 + $0x58] sm:$0xff]  }
   0x5   :  { %327 = vmatprep.mubr.msk.bf16.mxu1 %vm170_vm0, %v379_v7  ;;  %v368_v11 = vld [vmem:[%s548_s1 + $0x40] sm:$0xff]   ;;  %v369_v12 = vld [vmem:[%s548_s1 + $0x48] sm:$0xff]   ;;  %v380_v20 = vld [vmem:[%s549_s0 + $0x14] ss:$8 sps:$4 sm:$0xff]  }
   0x6   :  { %190 = vmatpush1.bf16.msra.mxu0 %v361_v2  ;;  %346 = vmatpush1.bf16.msra.mxu1 %v361_v2  ;;  %v372_v15 = vld [vmem:[%s548_s1 + $0x60] sm:$0xff]   ;;  %v373_v16 = vld [vmem:[%s548_s1 + $0x68] ss:$0 sps:$4 sm:$0xff]   ;;  %v382_v21 = vld [vmem:[%s549_s0 + $0x34] ss:$8 sps:$4 sm:$0xff]  }
   0x7   :  { %191 = vmatprep.subr.bf16.mxu0 %v386_v0  ;;  %333 = vmatprep.subr.bf16.mxu1 %v386_v0  ;;  %v185_v17 = vsel %vm183_vm1, %v373_v16, 0  ;;  %v374_v18 = vld [vmem:[%s549_s0] ss:$8 sps:$4 sm:$0xff]   ;;  %v384_v22 = vld [vmem:[%s549_s0 + $0x10] ss:$8 sps:$4 sm:$0xff]  }
   0x8   :  { %v377_v19 = vld [vmem:[%s549_s0 + $0x20] ss:$8 sps:$4 sm:$0xff]   ;;  %v385_v23 = vld [vmem:[%s549_s0 + $0x30] ss:$8 sps:$4 sm:$0xff]  }
   0x9   :  { %v329_v24 = vld [vmem:[%s550_s2] ss:$0 sm:$0xff] }
   0xa   :  { %192 = vmatpush1.bf16.msra.mxu0 %v362_v3  ;;  %347 = vmatpush1.bf16.msra.mxu1 %v362_v3  ;;  %v330_v26 = vld [vmem:[%s551_s3] ss:$0 sm:$0xff] }
   0xb   :  { %193 = vmatprep.subr.bf16.mxu0 %v386_v0  ;;  %334 = vmatprep.subr.bf16.mxu1 %v386_v0 }
   0xe   :  { %194 = vmatpush1.bf16.msra.mxu0 %v363_v4  ;;  %348 = vmatpush1.bf16.msra.mxu1 %v363_v4 }
   0xf   :  { %195 = vmatprep.subr.bf16.mxu0 %v386_v0  ;;  %335 = vmatprep.subr.bf16.mxu1 %v386_v0 }
  0x12   :  { %196 = vmatpush1.bf16.msra.mxu0 %v364_v5  ;;  %349 = vmatpush1.bf16.msra.mxu1 %v364_v5 }
  0x13   :  { %197 = vmatprep.subr.bf16.mxu0 %v386_v0  ;;  %336 = vmatprep.subr.bf16.mxu1 %v386_v0 }
  0x16   :  { %198 = vmatpush1.bf16.msra.mxu0 %v365_v8  ;;  %350 = vmatpush1.bf16.msra.mxu1 %v365_v8 }
  0x17   :  { %199 = vmatprep.subr.bf16.mxu0 %v386_v0  ;;  %337 = vmatprep.subr.bf16.mxu1 %v386_v0 }
  0x1a   :  { %200 = vmatpush1.bf16.msra.mxu0 %v366_v9  ;;  %351 = vmatpush1.bf16.msra.mxu1 %v366_v9 }
  0x1b   :  { %201 = vmatprep.subr.bf16.mxu0 %v386_v0  ;;  %338 = vmatprep.subr.bf16.mxu1 %v386_v0 }
  0x1e   :  { %202 = vmatpush1.bf16.msra.mxu0 %v367_v10  ;;  %352 = vmatpush1.bf16.msra.mxu1 %v367_v10 }
  0x1f   :  { %203 = vmatprep.subr.bf16.mxu0 %v386_v0  ;;  %339 = vmatprep.subr.bf16.mxu1 %v386_v0 }
  0x22   :  { %204 = vmatpush1.bf16.msra.mxu0 %v368_v11  ;;  %353 = vmatpush1.bf16.msra.mxu1 %v368_v11 }
  0x23   :  { %205 = vmatprep.subr.bf16.mxu0 %v386_v0  ;;  %340 = vmatprep.subr.bf16.mxu1 %v386_v0 }
  0x26   :  { %206 = vmatpush1.bf16.msra.mxu0 %v369_v12  ;;  %354 = vmatpush1.bf16.msra.mxu1 %v369_v12 }
  0x27   :  { %207 = vmatprep.subr.bf16.mxu0 %v386_v0  ;;  %341 = vmatprep.subr.bf16.mxu1 %v386_v0 }
  0x2a   :  { %208 = vmatpush1.bf16.msra.mxu0 %v370_v13  ;;  %355 = vmatpush1.bf16.msra.mxu1 %v370_v13 }
  0x2b   :  { %209 = vmatprep.subr.bf16.mxu0 %v386_v0  ;;  %342 = vmatprep.subr.bf16.mxu1 %v386_v0 }
  0x2e   :  { %210 = vmatpush1.bf16.msra.mxu0 %v371_v14  ;;  %356 = vmatpush1.bf16.msra.mxu1 %v371_v14 }
  0x2f   :  { %211 = vmatprep.subr.bf16.mxu0 %v386_v0  ;;  %343 = vmatprep.subr.bf16.mxu1 %v386_v0 }
  0x32   :  { %212 = vmatpush1.bf16.msra.mxu0 %v372_v15  ;;  %357 = vmatpush1.bf16.msra.mxu1 %v372_v15 }
  0x33   :  { %213 = vmatprep.subr.bf16.mxu0 %v386_v0  ;;  %344 = vmatprep.subr.bf16.mxu1 %v386_v0 }
  0x36   :  { %214 = vmatpush1.bf16.msra.mxu0 %v185_v17  ;;  %358 = vmatpush1.bf16.msra.mxu1 %v185_v17 }
  0x39   :  { %220 = vmatmul.mubr.bf16.vlgmr.msra.gmra.mrb[0].mxu0 %v374_v18  ;;  %236 = vmatmul.mubr.bf16.vlgmr.msra.gmra.mrb[0].mxu1 %v377_v19 }
  0x3a   :  { %326 = vmatprep.mubr.msk.bf16.mxu0 %vm170_vm0, %v380_v20  ;;  %328 = vmatprep.mubr.msk.bf16.mxu1 %vm170_vm0, %v382_v21 }
  0x41   :  { %228 = vmatmul.mubr.bf16.gmra.mrb[4].mxu0 %v384_v22  ;;  %244 = vmatmul.mubr.bf16.gmra.mrb[4].mxu1 %v385_v23 }
 0x10c   :  { %v221_v25 = vpop.f32.mrb[0].mxu0  ;;  %v237_v27 = vpop.f32.mrb[0].mxu1 }
 0x10d   :  { %v259_v28 = vmul.f32 %v329_v24, %v221_v25  ;;  %v263_v29 = vmul.f32 %v329_v24, %v237_v27  ;;  %v223_v30 = vpop.f32.mrb[1].mxu0  ;;  %v239_v31 = vpop.f32.mrb[1].mxu1 }
 0x10e   :  { %v224_v32 = vpop.f32.mrb[2].mxu0  ;;  %v240_v33 = vpop.f32.mrb[2].mxu1 }
 0x10f   :  { %v274_v34 = vadd.f32 %v330_v26, %v259_v28  ;;  %v278_v35 = vadd.f32 %v330_v26, %v263_v29  ;;  %v260_v36 = vmul.f32 %v329_v24, %v224_v32  ;;  %v264_v37 = vmul.f32 %v329_v24, %v240_v33  ;;  %v226_v38 = vpop.f32.mrb[3].mxu0  ;;  %v242_v39 = vpop.f32.mrb[3].mxu1 }
 0x111   :  { %v282_v40 = vmax.f32 %v274_v34, 0.0  ;;  %v286_v41 = vmax.f32 %v278_v35, 0.0  ;;  %v275_v42 = vadd.f32 %v330_v26, %v260_v36  ;;  %v279_v43 = vadd.f32 %v330_v26, %v264_v37 }
 0x113   :  { %291 = vst.msk [vmem:[%s552_s4] sm:$0xff] %vm290_vm2, %v282_v40  ;;  %295 = vst.msk [vmem:[%s552_s4 + $0x20] sm:$0xff] %vm290_vm2, %v286_v41  ;;  %v283_v44 = vmax.f32 %v275_v42, 0.0  ;;  %v287_v45 = vmax.f32 %v279_v43, 0.0 }
 0x114   :  { %v229_v46 = vpop.f32.mrb[4].mxu0  ;;  %v245_v47 = vpop.f32.mrb[4].mxu1 }
 0x115   :  { %292 = vst.msk [vmem:[%s552_s4 + $0x8] sm:$0xff] %vm290_vm2, %v283_v44  ;;  %296 = vst.msk [vmem:[%s552_s4 + $0x28] sm:$0xff] %vm290_vm2, %v287_v45  ;;  %v261_v48 = vmul.f32 %v329_v24, %v229_v46  ;;  %v265_v49 = vmul.f32 %v329_v24, %v245_v47  ;;  %v231_v50 = vpop.f32.mrb[5].mxu0  ;;  %v247_v51 = vpop.f32.mrb[5].mxu1 }
 0x116   :  { %v232_v52 = vpop.f32.mrb[6].mxu0  ;;  %v248_v53 = vpop.f32.mrb[6].mxu1 }
 0x117   :  { %v276_v54 = vadd.f32 %v330_v26, %v261_v48  ;;  %v280_v55 = vadd.f32 %v330_v26, %v265_v49  ;;  %v262_v56 = vmul.f32 %v329_v24, %v232_v52  ;;  %v266_v57 = vmul.f32 %v329_v24, %v248_v53  ;;  %v234_v58 = vpop.f32.mrb[7].mxu0  ;;  %v250_v59 = vpop.f32.mrb[7].mxu1 }
 0x119   :  { %v284_v60 = vmax.f32 %v276_v54, 0.0  ;;  %v288_v61 = vmax.f32 %v280_v55, 0.0  ;;  %v277_v62 = vadd.f32 %v330_v26, %v262_v56  ;;  %v281_v63 = vadd.f32 %v330_v26, %v266_v57 }
 0x11b   :  { %293 = vst.msk [vmem:[%s552_s4 + $0x10] sm:$0xff] %vm290_vm2, %v284_v60  ;;  %297 = vst.msk [vmem:[%s552_s4 + $0x30] sm:$0xff] %vm290_vm2, %v288_v61  ;;  %v285_v0 = vmax.f32 %v277_v62, 0.0  ;;  %v289_v1 = vmax.f32 %v281_v63, 0.0 }
 0x11d   :  { %294 = vst.msk [vmem:[%s552_s4 + $0x18] sm:$0xff] %vm290_vm2, %v285_v0  ;;  %298 = vst.msk [vmem:[%s552_s4 + $0x38] sm:$0xff] %vm290_vm2, %v289_v1 }

// kernel: hourglass_forward.22
= control target key start
LH: loop header
LB: loop body
LE: loop exit
PB: predicated region body
PF: predicated region fallthrough
CT: control target
= control target key end

     0   :  { %v250_v0 = vmov 0   ;;  %vm137_vm0 = vcmask 719872   ;;  %vm141_vm1 = vcmask 1043456   ;;  %vm206_vm2 = vcmask 64512   ;;  %s336_s1 = inlined_call_operand.vmem [shape: bf16[216,8], index: 1, kind: input, shape index: {}]   ;;  %s337_s0 = inlined_call_operand.vmem [shape: bf16[16,216], index: 0, kind: input, shape index: {}]   ;;  %s338_s2 = inlined_call_operand.vmem [shape: f32[1,8], index: 2, kind: input, shape index: {}]   ;;  %s339_s3 = inlined_call_operand.vmem [shape: f32[1,8], index: 3, kind: input, shape index: {}]   ;;  %s340_s4 = inlined_call_operand.vmem [shape: f32[16,8], index: 4, kind: output, shape index: {}]  }
   0x1   :  { %145 = vmatprep.subr.bf16.mxu0 %v250_v0  ;;  %v233_v1 = vld [vmem:[%s336_s1] sm:$0xff]   ;;  %v234_v2 = vld [vmem:[%s336_s1 + $0x8] sm:$0xff]   ;;  %v235_v3 = vld [vmem:[%s336_s1 + $0x10] sm:$0xff]  }
   0x2   :  { %146 = vmatpush1.bf16.msra.mxu0 %v233_v1  ;;  %v236_v4 = vld [vmem:[%s336_s1 + $0x18] sm:$0xff]   ;;  %v237_v5 = vld [vmem:[%s336_s1 + $0x20] sm:$0xff]   ;;  %v238_v7 = vld [vmem:[%s336_s1 + $0x28] sm:$0xff]  }
   0x3   :  { %147 = vmatprep.subr.bf16.mxu0 %v250_v0  ;;  %v249_v6 = vld [vmem:[%s337_s0 + $0x4] ss:$8 sps:$4 sm:$0xff]   ;;  %v239_v8 = vld [vmem:[%s336_s1 + $0x30] sm:$0xff]   ;;  %v240_v9 = vld [vmem:[%s336_s1 + $0x38] sm:$0xff]  }
   0x4   :  { %229 = vmatprep.mubr.msk.bf16.mxu0 %vm137_vm0, %v249_v6  ;;  %v241_v10 = vld [vmem:[%s336_s1 + $0x40] sm:$0xff]   ;;  %v242_v11 = vld [vmem:[%s336_s1 + $0x48] sm:$0xff]   ;;  %v243_v12 = vld [vmem:[%s336_s1 + $0x50] sm:$0xff]  }
   0x5   :  { %v244_v13 = vld [vmem:[%s336_s1 + $0x58] sm:$0xff]   ;;  %v245_v14 = vld [vmem:[%s336_s1 + $0x60] sm:$0xff]   ;;  %v246_v15 = vld [vmem:[%s336_s1 + $0x68] ss:$0 sps:$4 sm:$0xff]  }
   0x6   :  { %148 = vmatpush1.bf16.msra.mxu0 %v234_v2  ;;  %v143_v16 = vsel %vm141_vm1, %v246_v15, 0  ;;  %v247_v17 = vld [vmem:[%s337_s0] ss:$8 sps:$4 sm:$0xff]  }
   0x7   :  { %149 = vmatprep.subr.bf16.mxu0 %v250_v0  ;;  %v230_v18 = vld [vmem:[%s338_s2] ss:$0 sm:$0xff] }
   0x8   :  { %v231_v20 = vld [vmem:[%s339_s3] ss:$0 sm:$0xff] }
   0xa   :  { %150 = vmatpush1.bf16.msra.mxu0 %v235_v3 }
   0xb   :  { %151 = vmatprep.subr.bf16.mxu0 %v250_v0 }
   0xe   :  { %152 = vmatpush1.bf16.msra.mxu0 %v236_v4 }
   0xf   :  { %153 = vmatprep.subr.bf16.mxu0 %v250_v0 }
  0x12   :  { %154 = vmatpush1.bf16.msra.mxu0 %v237_v5 }
  0x13   :  { %155 = vmatprep.subr.bf16.mxu0 %v250_v0 }
  0x16   :  { %156 = vmatpush1.bf16.msra.mxu0 %v238_v7 }
  0x17   :  { %157 = vmatprep.subr.bf16.mxu0 %v250_v0 }
  0x1a   :  { %158 = vmatpush1.bf16.msra.mxu0 %v239_v8 }
  0x1b   :  { %159 = vmatprep.subr.bf16.mxu0 %v250_v0 }
  0x1e   :  { %160 = vmatpush1.bf16.msra.mxu0 %v240_v9 }
  0x1f   :  { %161 = vmatprep.subr.bf16.mxu0 %v250_v0 }
  0x22   :  { %162 = vmatpush1.bf16.msra.mxu0 %v241_v10 }
  0x23   :  { %163 = vmatprep.subr.bf16.mxu0 %v250_v0 }
  0x26   :  { %164 = vmatpush1.bf16.msra.mxu0 %v242_v11 }
  0x27   :  { %165 = vmatprep.subr.bf16.mxu0 %v250_v0 }
  0x2a   :  { %166 = vmatpush1.bf16.msra.mxu0 %v243_v12 }
  0x2b   :  { %167 = vmatprep.subr.bf16.mxu0 %v250_v0 }
  0x2e   :  { %168 = vmatpush1.bf16.msra.mxu0 %v244_v13 }
  0x2f   :  { %169 = vmatprep.subr.bf16.mxu0 %v250_v0 }
  0x32   :  { %170 = vmatpush1.bf16.msra.mxu0 %v245_v14 }
  0x33   :  { %171 = vmatprep.subr.bf16.mxu0 %v250_v0 }
  0x36   :  { %172 = vmatpush1.bf16.msra.mxu0 %v143_v16 }
  0x39   :  { %178 = vmatmul.mubr.bf16.vlgmr.msra.gmra.mrb[0].mxu0 %v247_v17 }
 0x10c   :  { %v179_v19 = vpop.f32.mrb[0].mxu0 }
 0x10d   :  { %v193_v21 = vmul.f32 %v230_v18, %v179_v19  ;;  %v181_v22 = vpop.f32.mrb[1].mxu0 }
 0x10e   :  { %v182_v23 = vpop.f32.mrb[2].mxu0 }
 0x10f   :  { %v202_v24 = vadd.f32 %v231_v20, %v193_v21  ;;  %v194_v25 = vmul.f32 %v230_v18, %v182_v23  ;;  %v184_v26 = vpop.f32.mrb[3].mxu0 }
 0x111   :  { %v204_v27 = vmax.f32 %v202_v24, 0.0  ;;  %v203_v28 = vadd.f32 %v231_v20, %v194_v25 }
 0x113   :  { %207 = vst.msk [vmem:[%s340_s4] sm:$0xff] %vm206_vm2, %v204_v27  ;;  %v205_v29 = vmax.f32 %v203_v28, 0.0 }
 0x115   :  { %208 = vst.msk [vmem:[%s340_s4 + $0x8] sm:$0xff] %vm206_vm2, %v205_v29 }

// kernel: hourglass_forward.31
= control target key start
LH: loop header
LB: loop body
LE: loop exit
PB: predicated region body
PF: predicated region fallthrough
CT: control target
= control target key end

     0   :  { %v168_v0 = vmov 0.0   ;;  %vm169_vm0 = vmmov 0   ;;  %vm60_vm1 = vcmask 523264   ;;  %vm129_vm2 = vcmask 64512   ;;  %s233_s1 = inlined_call_operand.vmem [shape: bf16[64,8], index: 1, kind: input, shape index: {}]   ;;  %s234_s0 = inlined_call_operand.vmem [shape: bf16[16,64], index: 0, kind: input, shape index: {}]   ;;  %s235_s2 = inlined_call_operand.vmem [shape: f32[1,8], index: 2, kind: input, shape index: {}]   ;;  %s236_s3 = inlined_call_operand.vmem [shape: f32[1,8], index: 3, kind: input, shape index: {}]   ;;  %s237_s4 = inlined_call_operand.vmem [shape: f32[16,8], index: 4, kind: input, shape index: {}]   ;;  %s238_s5 = inlined_call_operand.vmem [shape: f32[16,8], index: 5, kind: output, shape index: {}]  }
   0x1   :  { %149 = vmatprep.subr.bf16.mxu0 %v168_v0  ;;  %v163_v1 = vld [vmem:[%s233_s1] sm:$0xff]   ;;  %157 = vmatprep.mubr.msk.bf16.mxu0 %vm169_vm0, %v168_v0  ;;  %v164_v2 = vld [vmem:[%s233_s1 + $0x8] sm:$0xff]   ;;  %v165_v3 = vld [vmem:[%s233_s1 + $0x10] sm:$0xff]  }
   0x2   :  { %150 = vmatpush3.bf16.msra.mxu0 %v163_v1  ;;  %v166_v4 = vld [vmem:[%s233_s1 + $0x18] sm:$0xff]   ;;  %v167_v5 = vld [vmem:[%s234_s0] sm:$0xff]   ;;  %v124_v16 = vld [vmem:[%s237_s4 + $0x8] sm:$0xff] }
   0x3   :  { %151 = vmatprep.subr.bf16.mxu0 %v168_v0  ;;  %v142_v6 = vld [vmem:[%s235_s2] ss:$0 sm:$0xff] }
   0x4   :  { %v143_v8 = vld [vmem:[%s236_s3] ss:$0 sm:$0xff] }
   0x5   :  { %v123_v11 = vld [vmem:[%s237_s4] sm:$0xff] }
   0x6   :  { %152 = vmatpush3.bf16.msra.mxu0 %v164_v2 }
   0x7   :  { %153 = vmatprep.subr.bf16.mxu0 %v168_v0 }
   0xa   :  { %154 = vmatpush3.bf16.msra.mxu0 %v165_v3 }
   0xb   :  { %155 = vmatprep.subr.bf16.mxu0 %v168_v0 }
   0xe   :  { %156 = vmatpush3.bf16.msra.mxu0 %v166_v4 }
  0x11   :  { %158 = vmatmul.mubr.msk.bf16.vlgmr.msra.gmra.mrb[0].mxu0 %vm60_vm1, %v167_v5 }
  0xe4   :  { %v98_v7 = vpop.f32.mrb[0].mxu0 }
  0xe5   :  { %v112_v9 = vmul.f32 %v142_v6, %v98_v7  ;;  %v159_v10 = vpop.f32.mrb[1].mxu0 }
  0xe6   :  { %v101_v12 = vpop.f32.mrb[2].mxu0 }
  0xe7   :  { %v121_v13 = vadd.f32 %v143_v8, %v112_v9  ;;  %v113_v14 = vmul.f32 %v142_v6, %v101_v12  ;;  %v160_v15 = vpop.f32.mrb[3].mxu0 }
  0xe9   :  { %v125_v17 = vadd.f32 %v123_v11, %v121_v13  ;;  %v122_v18 = vadd.f32 %v143_v8, %v113_v14 }
  0xeb   :  { %v127_v19 = vmax.f32 %v125_v17, 0.0  ;;  %v126_v20 = vadd.f32 %v124_v16, %v122_v18 }
  0xed   :  { %130 = vst.msk [vmem:[%s238_s5] sm:$0xff] %vm129_vm2, %v127_v19  ;;  %v128_v21 = vmax.f32 %v126_v20, 0.0 }
  0xef   :  { %131 = vst.msk [vmem:[%s238_s5 + $0x8] sm:$0xff] %vm129_vm2, %v128_v21 }

// kernel: hourglass_forward.30
= control target key start
LH: loop header
LB: loop body
LE: loop exit
PB: predicated region body
PF: predicated region fallthrough
CT: control target
= control target key end

     0   :  { %v142_v0 = vmov 0.0   ;;  %vm143_vm0 = vmmov 0   ;;  %vm44_vm1 = vcmask 261120   ;;  %vm113_vm2 = vcmask 64512   ;;  %s201_s1 = inlined_call_operand.vmem [shape: bf16[32,8], index: 1, kind: input, shape index: {}]   ;;  %s202_s0 = inlined_call_operand.vmem [shape: bf16[16,32], index: 0, kind: input, shape index: {}]   ;;  %s203_s2 = inlined_call_operand.vmem [shape: f32[1,8], index: 2, kind: input, shape index: {}]   ;;  %s204_s3 = inlined_call_operand.vmem [shape: f32[1,8], index: 3, kind: input, shape index: {}]   ;;  %s205_s4 = inlined_call_operand.vmem [shape: f32[16,8], index: 4, kind: input, shape index: {}]   ;;  %s206_s5 = inlined_call_operand.vmem [shape: f32[16,8], index: 5, kind: output, shape index: {}]  }
   0x1   :  { %129 = vmatprep.subr.bf16.mxu0 %v142_v0  ;;  %v139_v1 = vld [vmem:[%s201_s1] sm:$0xff]   ;;  %133 = vmatprep.mubr.msk.bf16.mxu0 %vm143_vm0, %v142_v0  ;;  %v140_v2 = vld [vmem:[%s201_s1 + $0x8] sm:$0xff]  }
   0x2   :  { %130 = vmatpush3.bf16.msra.mxu0 %v139_v1  ;;  %v141_v3 = vld [vmem:[%s202_s0] sm:$0xff]   ;;  %v108_v14 = vld [vmem:[%s205_s4 + $0x8] sm:$0xff] }
   0x3   :  { %131 = vmatprep.subr.bf16.mxu0 %v142_v0  ;;  %v124_v4 = vld [vmem:[%s203_s2] ss:$0 sm:$0xff] }
   0x4   :  { %v125_v6 = vld [vmem:[%s204_s3] ss:$0 sm:$0xff] }
   0x5   :  { %v107_v9 = vld [vmem:[%s205_s4] sm:$0xff] }
   0x6   :  { %132 = vmatpush3.bf16.msra.mxu0 %v140_v2 }
   0x9   :  { %134 = vmatmul.mubr.msk.bf16.vlgmr.msra.gmra.mrb[0].mxu0 %vm44_vm1, %v141_v3 }
  0xdc   :  { %v82_v5 = vpop.f32.mrb[0].mxu0 }
  0xdd   :  { %v96_v7 = vmul.f32 %v124_v4, %v82_v5  ;;  %v135_v8 = vpop.f32.mrb[1].mxu0 }
  0xde   :  { %v85_v10 = vpop.f32.mrb[2].mxu0 }
  0xdf   :  { %v105_v11 = vadd.f32 %v125_v6, %v96_v7  ;;  %v97_v12 = vmul.f32 %v124_v4, %v85_v10  ;;  %v136_v13 = vpop.f32.mrb[3].mxu0 }
  0xe1   :  { %v109_v15 = vadd.f32 %v107_v9, %v105_v11  ;;  %v106_v16 = vadd.f32 %v125_v6, %v97_v12 }
  0xe3   :  { %v111_v17 = vmax.f32 %v109_v15, 0.0  ;;  %v110_v18 = vadd.f32 %v108_v14, %v106_v16 }
  0xe5   :  { %114 = vst.msk [vmem:[%s206_s5] sm:$0xff] %vm113_vm2, %v111_v17  ;;  %v112_v19 = vmax.f32 %v110_v18, 0.0 }
  0xe7   :  { %115 = vst.msk [vmem:[%s206_s5 + $0x8] sm:$0xff] %vm113_vm2, %v112_v19 }

// kernel: hourglass_forward.28
= control target key start
LH: loop header
LB: loop body
LE: loop exit
PB: predicated region body
PF: predicated region fallthrough
CT: control target
= control target key end

     0   :  { %v129_v0 = vmov 0.0   ;;  %vm130_vm0 = vmmov 0   ;;  %vm36_vm1 = vcmask 130048   ;;  %vm105_vm2 = vcmask 64512   ;;  %s185_s1 = inlined_call_operand.vmem [shape: bf16[16,8], index: 1, kind: input, shape index: {}]   ;;  %s186_s0 = inlined_call_operand.vmem [shape: bf16[16,16], index: 0, kind: input, shape index: {}]   ;;  %s187_s2 = inlined_call_operand.vmem [shape: f32[1,8], index: 2, kind: input, shape index: {}]   ;;  %s188_s3 = inlined_call_operand.vmem [shape: f32[1,8], index: 3, kind: input, shape index: {}]   ;;  %s189_s4 = inlined_call_operand.vmem [shape: f32[16,8], index: 4, kind: input, shape index: {}]   ;;  %s190_s5 = inlined_call_operand.vmem [shape: f32[16,8], index: 5, kind: output, shape index: {}]  }
   0x1   :  { %119 = vmatprep.subr.bf16.mxu0 %v129_v0  ;;  %v127_v1 = vld [vmem:[%s185_s1] sm:$0xff]   ;;  %121 = vmatprep.mubr.msk.bf16.mxu0 %vm130_vm0, %v129_v0  ;;  %v100_v13 = vld [vmem:[%s189_s4 + $0x8] sm:$0xff] }
   0x2   :  { %v128_v2 = vld [vmem:[%s186_s0] sm:$0xff]   ;;  %120 = vmatpush3.bf16.msra.mxu0 %v127_v1 }
   0x3   :  { %v115_v3 = vld [vmem:[%s187_s2] ss:$0 sm:$0xff] }
   0x4   :  { %v116_v5 = vld [vmem:[%s188_s3] ss:$0 sm:$0xff] }
   0x5   :  { %122 = vmatmul.mubr.msk.bf16.vlgmr.msra.gmra.mrb[0].mxu0 %vm36_vm1, %v128_v2  ;;  %v99_v8 = vld [vmem:[%s189_s4] sm:$0xff] }
  0xd8   :  { %v74_v4 = vpop.f32.mrb[0].mxu0 }
  0xd9   :  { %v88_v6 = vmul.f32 %v115_v3, %v74_v4  ;;  %v123_v7 = vpop.f32.mrb[1].mxu0 }
  0xda   :  { %v77_v9 = vpop.f32.mrb[2].mxu0 }
  0xdb   :  { %v97_v10 = vadd.f32 %v116_v5, %v88_v6  ;;  %v89_v11 = vmul.f32 %v115_v3, %v77_v9  ;;  %v124_v12 = vpop.f32.mrb[3].mxu0 }
  0xdd   :  { %v101_v14 = vadd.f32 %v99_v8, %v97_v10  ;;  %v98_v15 = vadd.f32 %v116_v5, %v89_v11 }
  0xdf   :  { %v103_v16 = vmax.f32 %v101_v14, 0.0  ;;  %v102_v17 = vadd.f32 %v100_v13, %v98_v15 }
  0xe1   :  { %106 = vst.msk [vmem:[%s190_s5] sm:$0xff] %vm105_vm2, %v103_v16  ;;  %v104_v18 = vmax.f32 %v102_v17, 0.0 }
  0xe3   :  { %107 = vst.msk [vmem:[%s190_s5 + $0x8] sm:$0xff] %vm105_vm2, %v104_v18 }

// kernel: hourglass_forward.24
= control target key start
LH: loop header
LB: loop body
LE: loop exit
PB: predicated region body
PF: predicated region fallthrough
CT: control target
= control target key end

     0   :  { %vm33_vm0 = vcmask 1043456   ;;  %v123_v0 = vmov 0.0   ;;  %vm124_vm1 = vmmov 0   ;;  %vm29_vm2 = vcmask 64512   ;;  %s182_s1 = inlined_call_operand.vmem [shape: bf16[8,8], index: 1, kind: input, shape index: {}]   ;;  %s183_s0 = inlined_call_operand.vmem [shape: bf16[16,8], index: 0, kind: input, shape index: {}]   ;;  %s184_s2 = inlined_call_operand.vmem [shape: f32[1,8], index: 2, kind: input, shape index: {}]   ;;  %s185_s3 = inlined_call_operand.vmem [shape: f32[1,8], index: 3, kind: input, shape index: {}]   ;;  %s186_s4 = inlined_call_operand.vmem [shape: f32[16,8], index: 4, kind: input, shape index: {}]   ;;  %s187_s5 = inlined_call_operand.vmem [shape: f32[16,8], index: 5, kind: output, shape index: {}]  }
   0x1   :  { %114 = vmatprep.subr.bf16.mxu0 %v123_v0  ;;  %v23_v1 = vld [vmem:[%s182_s1] sm:$0xf]  ;;  %116 = vmatprep.mubr.msk.bf16.mxu0 %vm124_vm1, %v123_v0  ;;  %v97_v14 = vld [vmem:[%s186_s4 + $0x8] sm:$0xff] }
   0x2   :  { %v35_v2 = vsel %vm33_vm0, %v23_v1, 0  ;;  %v122_v3 = vld [vmem:[%s183_s0] sm:$0xff]  }
   0x3   :  { %115 = vmatpush3.bf16.msra.mxu0 %v35_v2  ;;  %v110_v4 = vld [vmem:[%s184_s2] ss:$0 sm:$0xff] }
   0x4   :  { %v111_v6 = vld [vmem:[%s185_s3] ss:$0 sm:$0xff] }
   0x5   :  { %v96_v9 = vld [vmem:[%s186_s4] sm:$0xff] }
   0x6   :  { %117 = vmatmul.mubr.msk.bf16.vlgmr.msra.gmra.mrb[0].mxu0 %vm29_vm2, %v122_v3 }
  0xd9   :  { %v71_v5 = vpop.f32.mrb[0].mxu0 }
  0xda   :  { %v85_v7 = vmul.f32 %v110_v4, %v71_v5  ;;  %v118_v8 = vpop.f32.mrb[1].mxu0 }
  0xdb   :  { %v74_v10 = vpop.f32.mrb[2].mxu0 }
  0xdc   :  { %v94_v11 = vadd.f32 %v111_v6, %v85_v7  ;;  %v86_v12 = vmul.f32 %v110_v4, %v74_v10  ;;  %v119_v13 = vpop.f32.mrb[3].mxu0 }
  0xde   :  { %v98_v15 = vadd.f32 %v96_v9, %v94_v11  ;;  %v95_v16 = vadd.f32 %v111_v6, %v86_v12 }
  0xe0   :  { %v100_v17 = vmax.f32 %v98_v15, 0.0  ;;  %v99_v18 = vadd.f32 %v97_v14, %v95_v16 }
  0xe2   :  { %102 = vst.msk [vmem:[%s187_s5] sm:$0xff] %vm29_vm2, %v100_v17  ;;  %v101_v19 = vmax.f32 %v99_v18, 0.0 }
  0xe4   :  { %103 = vst.msk [vmem:[%s187_s5 + $0x8] sm:$0xff] %vm29_vm2, %v101_v19 }

// kernel: hourglass_forward.39
= control target key start
LH: loop header
LB: loop body
LE: loop exit
PB: predicated region body
PF: predicated region fallthrough
CT: control target
= control target key end

     0   :  { %vm78_vm0 = vcmask 523264   ;;  %vm186_vm1 = vcmask 31744   ;;  %s344_s1 = inlined_call_operand.vmem [shape: bf16[64,4], index: 1, kind: input, shape index: {}]   ;;  %s345_s0 = inlined_call_operand.vmem [shape: bf16[64,64], index: 0, kind: input, shape index: {}]   ;;  %s346_s2 = inlined_call_operand.vmem [shape: f32[1,4], index: 2, kind: input, shape index: {}]   ;;  %s347_s3 = inlined_call_operand.vmem [shape: f32[1,4], index: 3, kind: input, shape index: {}]   ;;  %s348_s4 = inlined_call_operand.vmem [shape: f32[64,4], index: 4, kind: output, shape index: {}]  }
   0x1   :  { %v245_v0 = vld [vmem:[%s344_s1] sm:$0xff]   ;;  %v246_v1 = vld [vmem:[%s344_s1 + $0x8] sm:$0xff]   ;;  %v247_v2 = vld [vmem:[%s344_s1 + $0x10] sm:$0xff]  }
   0x2   :  { %221 = vmatprep.subr.bf16.mxu0 %v245_v0  ;;  %237 = vmatprep.subr.bf16.mxu1 %v245_v0  ;;  %v249_v3 = vld [vmem:[%s345_s0] sm:$0xff]   ;;  %v250_v4 = vld [vmem:[%s345_s0 + $0x10] sm:$0xff]   ;;  %v248_v5 = vld [vmem:[%s344_s1 + $0x18] sm:$0xff]  }
   0x3   :  { %222 = vmatpush3.bf16.msra.mxu0 %v245_v0  ;;  %241 = vmatpush3.bf16.msra.mxu1 %v245_v0  ;;  %v251_v6 = vld [vmem:[%s345_s0 + $0x8] sm:$0xff]   ;;  %v252_v7 = vld [vmem:[%s345_s0 + $0x18] sm:$0xff]   ;;  %v211_v8 = vld [vmem:[%s346_s2] ss:$0 sm:$0xff] }
   0x4   :  { %223 = vmatprep.subr.bf16.mxu0 %v246_v1  ;;  %238 = vmatprep.subr.bf16.mxu1 %v246_v1  ;;  %v212_v10 = vld [vmem:[%s347_s3] ss:$0 sm:$0xff] }
   0x5   :  { %229 = vmatprep.mubr.msk.bf16.mxu0 %vm78_vm0, %v249_v3  ;;  %233 = vmatprep.mubr.msk.bf16.mxu1 %vm78_vm0, %v250_v4 }
   0x7   :  { %224 = vmatpush3.bf16.msra.mxu0 %v246_v1  ;;  %242 = vmatpush3.bf16.msra.mxu1 %v246_v1 }
   0x8   :  { %225 = vmatprep.subr.bf16.mxu0 %v247_v2  ;;  %239 = vmatprep.subr.bf16.mxu1 %v247_v2 }
   0xb   :  { %226 = vmatpush3.bf16.msra.mxu0 %v247_v2  ;;  %243 = vmatpush3.bf16.msra.mxu1 %v247_v2 }
   0xc   :  { %227 = vmatprep.subr.bf16.mxu0 %v248_v5  ;;  %240 = vmatprep.subr.bf16.mxu1 %v248_v5 }
   0xf   :  { %228 = vmatpush3.bf16.msra.mxu0 %v248_v5  ;;  %244 = vmatpush3.bf16.msra.mxu1 %v248_v5 }
  0x12   :  { %230 = vmatmul.mubr.msk.bf16.vlgmr.msra.gmra.mrb[0].mxu0 %vm78_vm0, %v251_v6  ;;  %234 = vmatmul.mubr.msk.bf16.vlgmr.msra.gmra.mrb[0].mxu1 %vm78_vm0, %v252_v7 }
  0xe5   :  { %v231_v9 = vpop.f32.mrb[0].mxu0  ;;  %v235_v11 = vpop.f32.mrb[0].mxu1 }
  0xe6   :  { %v165_v12 = vmul.f32 %v231_v9, %v211_v8  ;;  %v169_v13 = vmul.f32 %v235_v11, %v211_v8  ;;  %v125_v14 = vpop.f32.mrb[1].mxu0  ;;  %v141_v15 = vpop.f32.mrb[1].mxu1 }
  0xe7   :  { %v163_v16 = vmul.f32 %v211_v8, %v125_v14  ;;  %v167_v17 = vmul.f32 %v211_v8, %v141_v15  ;;  %v232_v18 = vpop.f32.mrb[2].mxu0  ;;  %v236_v19 = vpop.f32.mrb[2].mxu1 }
  0xe8   :  { %v180_v20 = vadd.f32 %v212_v10, %v165_v12  ;;  %v184_v21 = vadd.f32 %v212_v10, %v169_v13  ;;  %v166_v22 = vmul.f32 %v232_v18, %v211_v8  ;;  %v170_v23 = vmul.f32 %v236_v19, %v211_v8  ;;  %v128_v24 = vpop.f32.mrb[3].mxu0  ;;  %v144_v25 = vpop.f32.mrb[3].mxu1 }
  0xe9   :  { %v178_v26 = vadd.f32 %v212_v10, %v163_v16  ;;  %v182_v27 = vadd.f32 %v212_v10, %v167_v17  ;;  %v164_v28 = vmul.f32 %v211_v8, %v128_v24  ;;  %v168_v29 = vmul.f32 %v211_v8, %v144_v25 }
  0xea   :  { %189 = vst.msk [vmem:[%s348_s4 + $0x10] sm:$0xff] %vm186_vm1, %v180_v20  ;;  %193 = vst.msk [vmem:[%s348_s4 + $0x30] sm:$0xff] %vm186_vm1, %v184_v21  ;;  %v181_v30 = vadd.f32 %v212_v10, %v166_v22  ;;  %v185_v31 = vadd.f32 %v212_v10, %v170_v23 }
  0xeb   :  { %187 = vst.msk [vmem:[%s348_s4] sm:$0xff] %vm186_vm1, %v178_v26  ;;  %191 = vst.msk [vmem:[%s348_s4 + $0x20] sm:$0xff] %vm186_vm1, %v182_v27  ;;  %v179_v32 = vadd.f32 %v212_v10, %v164_v28  ;;  %v183_v33 = vadd.f32 %v212_v10, %v168_v29 }
  0xec   :  { %190 = vst.msk [vmem:[%s348_s4 + $0x18] sm:$0xff] %vm186_vm1, %v181_v30  ;;  %194 = vst.msk [vmem:[%s348_s4 + $0x38] sm:$0xff] %vm186_vm1, %v185_v31 }
  0xed   :  { %188 = vst.msk [vmem:[%s348_s4 + $0x8] sm:$0xff] %vm186_vm1, %v179_v32  ;;  %192 = vst.msk [vmem:[%s348_s4 + $0x28] sm:$0xff] %vm186_vm1, %v183_v33 }

// kernel: hourglass_forward.35
= control target key start
LH: loop header
LB: loop body
LE: loop exit
PB: predicated region body
PF: predicated region fallthrough
CT: control target
= control target key end

     0   :  { %vm62_vm0 = vcmask 261120   ;;  %vm170_vm1 = vcmask 31744   ;;  %s304_s1 = inlined_call_operand.vmem [shape: bf16[32,4], index: 1, kind: input, shape index: {}]   ;;  %s305_s0 = inlined_call_operand.vmem [shape: bf16[64,32], index: 0, kind: input, shape index: {}]   ;;  %s306_s2 = inlined_call_operand.vmem [shape: f32[1,4], index: 2, kind: input, shape index: {}]   ;;  %s307_s3 = inlined_call_operand.vmem [shape: f32[1,4], index: 3, kind: input, shape index: {}]   ;;  %s308_s4 = inlined_call_operand.vmem [shape: f32[64,4], index: 4, kind: output, shape index: {}]  }
   0x1   :  { %v217_v0 = vld [vmem:[%s304_s1] sm:$0xff]   ;;  %v218_v1 = vld [vmem:[%s304_s1 + $0x8] sm:$0xff]   ;;  %v220_v3 = vld [vmem:[%s305_s0 + $0x10] sm:$0xff]  }
   0x2   :  { %201 = vmatprep.subr.bf16.mxu0 %v217_v0  ;;  %213 = vmatprep.subr.bf16.mxu1 %v217_v0  ;;  %v219_v2 = vld [vmem:[%s305_s0] sm:$0xff]   ;;  %v221_v4 = vld [vmem:[%s305_s0 + $0x8] sm:$0xff]   ;;  %v222_v5 = vld [vmem:[%s305_s0 + $0x18] sm:$0xff]  }
   0x3   :  { %202 = vmatpush3.bf16.msra.mxu0 %v217_v0  ;;  %215 = vmatpush3.bf16.msra.mxu1 %v217_v0  ;;  %v193_v6 = vld [vmem:[%s306_s2] ss:$0 sm:$0xff] }
   0x4   :  { %203 = vmatprep.subr.bf16.mxu0 %v218_v1  ;;  %214 = vmatprep.subr.bf16.mxu1 %v218_v1  ;;  %v194_v8 = vld [vmem:[%s307_s3] ss:$0 sm:$0xff] }
   0x5   :  { %205 = vmatprep.mubr.msk.bf16.mxu0 %vm62_vm0, %v219_v2  ;;  %209 = vmatprep.mubr.msk.bf16.mxu1 %vm62_vm0, %v220_v3 }
   0x7   :  { %204 = vmatpush3.bf16.msra.mxu0 %v218_v1  ;;  %216 = vmatpush3.bf16.msra.mxu1 %v218_v1 }
   0xa   :  { %206 = vmatmul.mubr.msk.bf16.vlgmr.msra.gmra.mrb[0].mxu0 %vm62_vm0, %v221_v4  ;;  %210 = vmatmul.mubr.msk.bf16.vlgmr.msra.gmra.mrb[0].mxu1 %vm62_vm0, %v222_v5 }
  0xdd   :  { %v207_v7 = vpop.f32.mrb[0].mxu0  ;;  %v211_v9 = vpop.f32.mrb[0].mxu1 }
  0xde   :  { %v149_v10 = vmul.f32 %v207_v7, %v193_v6  ;;  %v153_v11 = vmul.f32 %v211_v9, %v193_v6  ;;  %v109_v12 = vpop.f32.mrb[1].mxu0  ;;  %v125_v13 = vpop.f32.mrb[1].mxu1 }
  0xdf   :  { %v147_v14 = vmul.f32 %v193_v6, %v109_v12  ;;  %v151_v15 = vmul.f32 %v193_v6, %v125_v13  ;;  %v208_v16 = vpop.f32.mrb[2].mxu0  ;;  %v212_v17 = vpop.f32.mrb[2].mxu1 }
  0xe0   :  { %v164_v18 = vadd.f32 %v194_v8, %v149_v10  ;;  %v168_v19 = vadd.f32 %v194_v8, %v153_v11  ;;  %v150_v20 = vmul.f32 %v208_v16, %v193_v6  ;;  %v154_v21 = vmul.f32 %v212_v17, %v193_v6  ;;  %v112_v22 = vpop.f32.mrb[3].mxu0  ;;  %v128_v23 = vpop.f32.mrb[3].mxu1 }
  0xe1   :  { %v162_v24 = vadd.f32 %v194_v8, %v147_v14  ;;  %v166_v25 = vadd.f32 %v194_v8, %v151_v15  ;;  %v148_v26 = vmul.f32 %v193_v6, %v112_v22  ;;  %v152_v27 = vmul.f32 %v193_v6, %v128_v23 }
  0xe2   :  { %173 = vst.msk [vmem:[%s308_s4 + $0x10] sm:$0xff] %vm170_vm1, %v164_v18  ;;  %177 = vst.msk [vmem:[%s308_s4 + $0x30] sm:$0xff] %vm170_vm1, %v168_v19  ;;  %v165_v28 = vadd.f32 %v194_v8, %v150_v20  ;;  %v169_v29 = vadd.f32 %v194_v8, %v154_v21 }
  0xe3   :  { %171 = vst.msk [vmem:[%s308_s4] sm:$0xff] %vm170_vm1, %v162_v24  ;;  %175 = vst.msk [vmem:[%s308_s4 + $0x20] sm:$0xff] %vm170_vm1, %v166_v25  ;;  %v163_v30 = vadd.f32 %v194_v8, %v148_v26  ;;  %v167_v31 = vadd.f32 %v194_v8, %v152_v27 }
  0xe4   :  { %174 = vst.msk [vmem:[%s308_s4 + $0x18] sm:$0xff] %vm170_vm1, %v165_v28  ;;  %178 = vst.msk [vmem:[%s308_s4 + $0x38] sm:$0xff] %vm170_vm1, %v169_v29 }
  0xe5   :  { %172 = vst.msk [vmem:[%s308_s4 + $0x8] sm:$0xff] %vm170_vm1, %v163_v30  ;;  %176 = vst.msk [vmem:[%s308_s4 + $0x28] sm:$0xff] %vm170_vm1, %v167_v31 }

// kernel: hourglass_forward.32
= control target key start
LH: loop header
LB: loop body
LE: loop exit
PB: predicated region body
PF: predicated region fallthrough
CT: control target
= control target key end

     0   :  { %vm60_vm0 = vcmask 1043456   ;;  %vm47_vm1 = vcmask 64512   ;;  %vm159_vm2 = vcmask 31744   ;;  %s283_s1 = inlined_call_operand.vmem [shape: bf16[8,4], index: 1, kind: input, shape index: {}]   ;;  %s284_s0 = inlined_call_operand.vmem [shape: bf16[64,8], index: 0, kind: input, shape index: {}]   ;;  %s285_s2 = inlined_call_operand.vmem [shape: f32[1,4], index: 2, kind: input, shape index: {}]   ;;  %s286_s3 = inlined_call_operand.vmem [shape: f32[1,4], index: 3, kind: input, shape index: {}]   ;;  %s287_s4 = inlined_call_operand.vmem [shape: f32[64,4], index: 4, kind: output, shape index: {}]  }
   0x1   :  { %v26_v0 = vld [vmem:[%s283_s1] sm:$0xf]  ;;  %v202_v3 = vld [vmem:[%s284_s0 + $0x10] sm:$0xff]   ;;  %v203_v4 = vld [vmem:[%s284_s0 + $0x8] sm:$0xff]  }
   0x2   :  { %199 = vmatprep.subr.msk.bf16.mxu0 %vm60_vm0, %v26_v0  ;;  %200 = vmatprep.subr.msk.bf16.mxu1 %vm60_vm0, %v26_v0  ;;  %v62_v1 = vsel %vm60_vm0, %v26_v0, 0  ;;  %v201_v2 = vld [vmem:[%s284_s0] sm:$0xff]   ;;  %v204_v5 = vld [vmem:[%s284_s0 + $0x18] sm:$0xff]  }
   0x3   :  { %188 = vmatpush3.bf16.msra.mxu0 %v62_v1  ;;  %198 = vmatpush3.bf16.msra.mxu1 %v62_v1  ;;  %v180_v6 = vld [vmem:[%s285_s2] ss:$0 sm:$0xff] }
   0x4   :  { %189 = vmatprep.mubr.msk.bf16.mxu0 %vm47_vm1, %v201_v2  ;;  %193 = vmatprep.mubr.msk.bf16.mxu1 %vm47_vm1, %v202_v3  ;;  %v181_v8 = vld [vmem:[%s286_s3] ss:$0 sm:$0xff] }
   0x6   :  { %190 = vmatmul.mubr.msk.bf16.vlgmr.msra.gmra.mrb[0].mxu0 %vm47_vm1, %v203_v4  ;;  %194 = vmatmul.mubr.msk.bf16.vlgmr.msra.gmra.mrb[0].mxu1 %vm47_vm1, %v204_v5 }
  0xd9   :  { %v191_v7 = vpop.f32.mrb[0].mxu0  ;;  %v195_v10 = vpop.f32.mrb[0].mxu1 }
  0xda   :  { %v138_v9 = vmul.f32 %v191_v7, %v180_v6  ;;  %v98_v11 = vpop.f32.mrb[1].mxu0  ;;  %v142_v12 = vmul.f32 %v195_v10, %v180_v6  ;;  %v114_v14 = vpop.f32.mrb[1].mxu1 }
  0xdb   :  { %v136_v13 = vmul.f32 %v180_v6, %v98_v11  ;;  %v192_v15 = vpop.f32.mrb[2].mxu0  ;;  %v140_v17 = vmul.f32 %v180_v6, %v114_v14  ;;  %v196_v19 = vpop.f32.mrb[2].mxu1 }
  0xdc   :  { %v153_v16 = vadd.f32 %v181_v8, %v138_v9  ;;  %v139_v18 = vmul.f32 %v192_v15, %v180_v6  ;;  %v101_v20 = vpop.f32.mrb[3].mxu0  ;;  %v157_v21 = vadd.f32 %v181_v8, %v142_v12  ;;  %v143_v23 = vmul.f32 %v196_v19, %v180_v6  ;;  %v117_v25 = vpop.f32.mrb[3].mxu1 }
  0xdd   :  { %v151_v22 = vadd.f32 %v181_v8, %v136_v13  ;;  %v137_v24 = vmul.f32 %v180_v6, %v101_v20  ;;  %v155_v26 = vadd.f32 %v181_v8, %v140_v17  ;;  %v141_v28 = vmul.f32 %v180_v6, %v117_v25 }
  0xde   :  { %162 = vst.msk [vmem:[%s287_s4 + $0x10] sm:$0xff] %vm159_vm2, %v153_v16  ;;  %v154_v27 = vadd.f32 %v181_v8, %v139_v18  ;;  %166 = vst.msk [vmem:[%s287_s4 + $0x30] sm:$0xff] %vm159_vm2, %v157_v21  ;;  %v158_v29 = vadd.f32 %v181_v8, %v143_v23 }
  0xdf   :  { %160 = vst.msk [vmem:[%s287_s4] sm:$0xff] %vm159_vm2, %v151_v22  ;;  %v152_v30 = vadd.f32 %v181_v8, %v137_v24  ;;  %164 = vst.msk [vmem:[%s287_s4 + $0x20] sm:$0xff] %vm159_vm2, %v155_v26  ;;  %v156_v31 = vadd.f32 %v181_v8, %v141_v28 }
  0xe0   :  { %163 = vst.msk [vmem:[%s287_s4 + $0x18] sm:$0xff] %vm159_vm2, %v154_v27  ;;  %167 = vst.msk [vmem:[%s287_s4 + $0x38] sm:$0xff] %vm159_vm2, %v158_v29 }
  0xe1   :  { %161 = vst.msk [vmem:[%s287_s4 + $0x8] sm:$0xff] %vm159_vm2, %v152_v30  ;;  %165 = vst.msk [vmem:[%s287_s4 + $0x28] sm:$0xff] %vm159_vm2, %v156_v31 }

// kernel: hourglass_forward.33
= control target key start
LH: loop header
LB: loop body
LE: loop exit
PB: predicated region body
PF: predicated region fallthrough
CT: control target
= control target key end

     0   :  { %vm54_vm0 = vcmask 130048   ;;  %vm162_vm1 = vcmask 31744   ;;  %s286_s1 = inlined_call_operand.vmem [shape: bf16[16,4], index: 1, kind: input, shape index: {}]   ;;  %s287_s0 = inlined_call_operand.vmem [shape: bf16[64,16], index: 0, kind: input, shape index: {}]   ;;  %s288_s2 = inlined_call_operand.vmem [shape: f32[1,4], index: 2, kind: input, shape index: {}]   ;;  %s289_s3 = inlined_call_operand.vmem [shape: f32[1,4], index: 3, kind: input, shape index: {}]   ;;  %s290_s4 = inlined_call_operand.vmem [shape: f32[64,4], index: 4, kind: output, shape index: {}]  }
   0x1   :  { %v203_v0 = vld [vmem:[%s286_s1] sm:$0xff]   ;;  %v205_v2 = vld [vmem:[%s287_s0 + $0x10] sm:$0xff]   ;;  %v206_v3 = vld [vmem:[%s287_s0 + $0x8] sm:$0xff]  }
   0x2   :  { %v204_v1 = vld [vmem:[%s287_s0] sm:$0xff]   ;;  %191 = vmatprep.subr.bf16.mxu0 %v203_v0  ;;  %201 = vmatprep.subr.bf16.mxu1 %v203_v0  ;;  %v207_v4 = vld [vmem:[%s287_s0 + $0x18] sm:$0xff]  }
   0x3   :  { %192 = vmatpush3.bf16.msra.mxu0 %v203_v0  ;;  %202 = vmatpush3.bf16.msra.mxu1 %v203_v0  ;;  %v184_v5 = vld [vmem:[%s288_s2] ss:$0 sm:$0xff] }
   0x4   :  { %193 = vmatprep.mubr.msk.bf16.mxu0 %vm54_vm0, %v204_v1  ;;  %197 = vmatprep.mubr.msk.bf16.mxu1 %vm54_vm0, %v205_v2  ;;  %v185_v7 = vld [vmem:[%s289_s3] ss:$0 sm:$0xff] }
   0x6   :  { %194 = vmatmul.mubr.msk.bf16.vlgmr.msra.gmra.mrb[0].mxu0 %vm54_vm0, %v206_v3  ;;  %198 = vmatmul.mubr.msk.bf16.vlgmr.msra.gmra.mrb[0].mxu1 %vm54_vm0, %v207_v4 }
  0xd9   :  { %v195_v6 = vpop.f32.mrb[0].mxu0  ;;  %v199_v8 = vpop.f32.mrb[0].mxu1 }
  0xda   :  { %v141_v9 = vmul.f32 %v195_v6, %v184_v5  ;;  %v145_v10 = vmul.f32 %v199_v8, %v184_v5  ;;  %v101_v11 = vpop.f32.mrb[1].mxu0  ;;  %v117_v12 = vpop.f32.mrb[1].mxu1 }
  0xdb   :  { %v139_v13 = vmul.f32 %v184_v5, %v101_v11  ;;  %v143_v14 = vmul.f32 %v184_v5, %v117_v12  ;;  %v196_v15 = vpop.f32.mrb[2].mxu0  ;;  %v200_v16 = vpop.f32.mrb[2].mxu1 }
  0xdc   :  { %v156_v17 = vadd.f32 %v185_v7, %v141_v9  ;;  %v160_v18 = vadd.f32 %v185_v7, %v145_v10  ;;  %v142_v19 = vmul.f32 %v196_v15, %v184_v5  ;;  %v146_v20 = vmul.f32 %v200_v16, %v184_v5  ;;  %v104_v21 = vpop.f32.mrb[3].mxu0  ;;  %v120_v22 = vpop.f32.mrb[3].mxu1 }
  0xdd   :  { %v154_v23 = vadd.f32 %v185_v7, %v139_v13  ;;  %v158_v24 = vadd.f32 %v185_v7, %v143_v14  ;;  %v140_v25 = vmul.f32 %v184_v5, %v104_v21  ;;  %v144_v26 = vmul.f32 %v184_v5, %v120_v22 }
  0xde   :  { %165 = vst.msk [vmem:[%s290_s4 + $0x10] sm:$0xff] %vm162_vm1, %v156_v17  ;;  %169 = vst.msk [vmem:[%s290_s4 + $0x30] sm:$0xff] %vm162_vm1, %v160_v18  ;;  %v157_v27 = vadd.f32 %v185_v7, %v142_v19  ;;  %v161_v28 = vadd.f32 %v185_v7, %v146_v20 }
  0xdf   :  { %163 = vst.msk [vmem:[%s290_s4] sm:$0xff] %vm162_vm1, %v154_v23  ;;  %167 = vst.msk [vmem:[%s290_s4 + $0x20] sm:$0xff] %vm162_vm1, %v158_v24  ;;  %v155_v29 = vadd.f32 %v185_v7, %v140_v25  ;;  %v159_v30 = vadd.f32 %v185_v7, %v144_v26 }
  0xe0   :  { %166 = vst.msk [vmem:[%s290_s4 + $0x18] sm:$0xff] %vm162_vm1, %v157_v27  ;;  %170 = vst.msk [vmem:[%s290_s4 + $0x38] sm:$0xff] %vm162_vm1, %v161_v28 }
  0xe1   :  { %164 = vst.msk [vmem:[%s290_s4 + $0x8] sm:$0xff] %vm162_vm1, %v155_v29  ;;  %168 = vst.msk [vmem:[%s290_s4 + $0x28] sm:$0xff] %vm162_vm1, %v159_v30 }

</bundles_post_ra>
